<compile_context>
chip_gen: v5e
topology: v5e:2x2
jax: 0.10.0
libtpu: 0.0.40
codegen_flags: <defaults>
</compile_context>

<pallas_src>
import functools

import numpy as np

import jax
import jax.numpy as jnp
from jax.experimental import pallas as pl
from jax.experimental.pallas import tpu as pltpu

EPS = 1e-5


# ------------------------------- fused kernel --------------------------------

def _big_residual_kernel(x_ref, w_ref, b_ref, dw_ref, o_ref,
                         *, W, Ml, layout, use_res0):
    """Whole BigResidual forward in one invocation; everything VMEM-resident."""
    x = x_ref[...]                                     # (Cin, N*H*W), spatial+batch on lanes

    def block(inp, L):
        hidden, cout = L["hidden"], L["cout"]

        # 1x1 expand (BN scale folded into weights) + bias + ReLU6
        r0, rows, cols = L["we"]
        h = jnp.dot(w_ref[r0:r0 + rows, 0:cols], inp,
                    preferred_element_type=jnp.float32)
        b0 = L["be"]
        h = jnp.clip(h + b_ref[b0:b0 + hidden], 0.0, 6.0)          # (hidden, Ml)

        # 3x3 depthwise conv: 8 XLU lane-rolls; border masks pre-folded into the
        # lane-dense weights so each tap is a single VPU multiply.  Three
        # independent accumulation chains (one per kernel row) instead of a
        # single 9-deep serial add chain.
        d0 = L["dw"]
        row_accs = []
        for dh in (-1, 0, 1):
            acc = None
            for dw in (-1, 0, 1):
                k = (dh + 1) * 3 + (dw + 1)
                s = dh * W + dw                        # flattened spatial offset
                shifted = h if s == 0 else pltpu.roll(h, (Ml - s) % Ml, axis=1)
                term = dw_ref[d0 + k * hidden:d0 + (k + 1) * hidden, :] * shifted
                acc = term if acc is None else acc + term
            row_accs.append(acc)
        b1 = L["bd"]
        d = jnp.clip((row_accs[0] + row_accs[1]) + row_accs[2]
                     + b_ref[b1:b1 + hidden], 0.0, 6.0)            # (hidden, Ml)

        # 1x1 project (BN folded) + bias, no activation
        r0, rows, cols = L["wp"]
        y = jnp.dot(w_ref[r0:r0 + rows, 0:cols], d,
                    preferred_element_type=jnp.float32)
        b2 = L["bp"]
        return y + b_ref[b2:b2 + cout]                  # (Cout, Ml)

    pre = block(x, layout[0])
    if use_res0:                                        # only legal when Cin == Cout
        pre = pre + x
    out1 = block(pre, layout[1]) + pre
    out2 = block(out1, layout[2]) + out1 + pre
    o_ref[...] = out2                                   # single wide unmasked lane-dense store


# ------------------------- parameter prep & packing ---------------------------

def _dw_border_masks(H, W):
    """(9, H*W) float32 masks zeroing taps that fall outside the 3x3 zero-pad halo."""
    m = np.arange(H * W)
    h, w = m // W, m % W
    rows = []
    for dh in (-1, 0, 1):
        for dw in (-1, 0, 1):
            valid = (h + dh >= 0) & (h + dh < H) & (w + dw >= 0) & (w + dw < W)
            rows.append(valid.astype(np.float32))
    return np.stack(rows, axis=0)


def _fold_bn(g, b, m, v, eps=EPS):
    scale = g / jnp.sqrt(v + eps)
    bias = b - m * scale
    return scale, bias


def _align8(n):
    return ((n + 7) // 8) * 8


def _pad2(a, rows, cols):
    r, c = a.shape
    return jnp.pad(a, ((0, rows - r), (0, cols - c)))


def pack_params(params, N, H, W):
    """Fold BN into conv weights, fold (tiled) border masks into the depthwise
    weights, and pack everything into three contiguous f32 slabs + a static
    layout table of Python ints used for in-kernel slicing."""
    Ml = N * H * W
    masks = jnp.asarray(np.tile(_dw_border_masks(H, W), (1, N)))   # (9, N*H*W)

    WCOLS = 16                       # max of Cin/hidden among the packed matrices
    w_rows, b_rows, dw_rows, layout = [], [], [], []
    w_off = b_off = dw_off = 0

    for name in ("block0", "block1", "block2"):
        p = params[name]
        s_e, be = _fold_bn(*p["bn_exp"])
        s_d, bd = _fold_bn(*p["bn_dw"])
        s_p, bp = _fold_bn(*p["bn_proj"])
        hidden, cin = p["w_exp"].shape
        cout = p["w_proj"].shape[0]

        we = p["w_exp"] * s_e[:, None]                               # (hidden, cin)
        wp = p["w_proj"] * s_p[:, None]                              # (cout, hidden)
        wd = (p["w_dw"] * s_d[:, None, None]).reshape(hidden, 9)     # (hidden, 9)
        wdm = wd.T[:, :, None] * masks[:, None, :]                   # (9, hidden, Ml)
        wdm = wdm.reshape(9 * hidden, Ml)                            # mask-folded, lane-dense

        L = {"hidden": hidden, "cin": cin, "cout": cout}

        # matmul-weight slab (width WCOLS, zero-padded lanes)
        L["we"] = (w_off, hidden, cin); w_off += _align8(hidden)
        L["wp"] = (w_off, cout, hidden); w_off += _align8(cout)
        w_rows += [_pad2(we, _align8(hidden), WCOLS),
                   _pad2(wp, _align8(cout), WCOLS)]

        # bias slab ((rows, 1), broadcast along lanes in-kernel)
        L["be"] = b_off; b_off += _align8(hidden)
        L["bd"] = b_off; b_off += _align8(hidden)
        L["bp"] = b_off; b_off += _align8(cout)
        b_rows += [_pad2(be[:, None], _align8(hidden), 1),
                   _pad2(bd[:, None], _align8(hidden), 1),
                   _pad2(bp[:, None], _align8(cout), 1)]

        # mask-folded depthwise slab (9*hidden rows per block, Ml lanes)
        L["dw"] = dw_off; dw_off += 9 * hidden
        dw_rows.append(wdm)

        layout.append(L)

    w_slab = jnp.concatenate(w_rows, axis=0).astype(jnp.float32)
    b_slab = jnp.concatenate(b_rows, axis=0).astype(jnp.float32)
    dw_slab = jnp.concatenate(dw_rows, axis=0).astype(jnp.float32)
    return w_slab, b_slab, dw_slab, tuple(layout)


# ------------------------------ wrapper ---------------------------------------

def big_residual_forward(x_nchw, w_slab, b_slab, dw_slab, *, layout, use_res0):
    N, Cin, H, W = x_nchw.shape
    Ml = N * H * W
    Cout = layout[-1]["cout"]
    if use_res0:
        assert Cin == Cout, "block0 residual requires Cin == Cout"

    # NCHW -> channels-major with batch folded into the lane dimension: (Cin, N*H*W).
    x_cm = jnp.transpose(x_nchw, (1, 0, 2, 3)).reshape(Cin, Ml)

    kern = functools.partial(_big_residual_kernel, W=W, Ml=Ml,
                             layout=layout, use_res0=use_res0)
    vmem = pl.BlockSpec(memory_space=pltpu.MemorySpace.VMEM)
    out = pl.pallas_call(
        kern,
        out_shape=jax.ShapeDtypeStruct((Cout, Ml), jnp.float32),
        in_specs=[vmem, vmem, vmem, vmem],
        out_specs=vmem,
    )(x_cm, w_slab, b_slab, dw_slab)

    return jnp.transpose(out.reshape(Cout, N, H, W), (1, 0, 2, 3))


# ------------------------------ raw parameters --------------------------------

def init_block_params(key, cin, cout, t):
    hidden = int(round(cin * t))
    k = jax.random.split(key, 6)

    def bn(kk, c):
        g = 1.0 + 0.1 * jax.random.normal(jax.random.fold_in(kk, 0), (c,), jnp.float32)
        b = 0.05 * jax.random.normal(jax.random.fold_in(kk, 1), (c,), jnp.float32)
        m = 0.02 * jax.random.normal(jax.random.fold_in(kk, 2), (c,), jnp.float32)
        v = 0.9 + 0.2 * jax.random.uniform(jax.random.fold_in(kk, 3), (c,), jnp.float32)
        return (g, b, m, v)

    return dict(
        w_exp=0.2 * jax.random.normal(k[0], (hidden, cin), jnp.float32),
        bn_exp=bn(k[1], hidden),
        w_dw=0.2 * jax.random.normal(k[2], (hidden, 3, 3), jnp.float32),
        bn_dw=bn(k[3], hidden),
        w_proj=0.2 * jax.random.normal(k[4], (cout, hidden), jnp.float32),
        bn_proj=bn(k[5], cout),
    )


# ------------------------------ pure-JAX reference ----------------------------

def _bn_ref(y, bn):
    g, b, m, v = bn
    scale = (g / jnp.sqrt(v + EPS))[None, :, None, None]
    return (y - m[None, :, None, None]) * scale + b[None, :, None, None]


def _ref_block(x, p, use_res, extra=None):
    N, C, H, W = x.shape
    h = jnp.einsum("nchw,dc->ndhw", x, p["w_exp"])
    h = jnp.clip(_bn_ref(h, p["bn_exp"]), 0.0, 6.0)
    hp = jnp.pad(h, ((0, 0), (0, 0), (1, 1), (1, 1)))
    acc = jnp.zeros_like(h)
    for i in range(3):
        for j in range(3):
            acc = acc + hp[:, :, i:i + H, j:j + W] * p["w_dw"][None, :, i, j, None, None]
    d = jnp.clip(_bn_ref(acc, p["bn_dw"]), 0.0, 6.0)
    y = _bn_ref(jnp.einsum("nchw,dc->ndhw", d, p["w_proj"]), p["bn_proj"])
    if use_res:
        y = y + x
    if extra is not None:
        y = y + extra
    return y


def ref_forward(x, params, use_res0):
    pre = _ref_block(x, params["block0"], use_res0)
    out = _ref_block(pre, params["block1"], True)
    out = _ref_block(out, params["block2"], True, extra=pre)
    return out


# ---------------------------------- main --------------------------------------

if __name__ == "__main__":
    key = jax.random.PRNGKey(0)
    kx, kp = jax.random.split(key)

    # small_residual_setting = (expansion, out_channels, n, first_stride)
    t, Cout, n, stride = 2, 8, 3, 1
    N, Cin, H, W = 2, 4, 16, 16

    x = jax.random.normal(kx, (N, Cin, H, W), jnp.float32)

    kb = jax.random.split(kp, 3)
    params = {
        "block0": init_block_params(kb[0], Cin, Cout, t),    # pre_inverted
        "block1": init_block_params(kb[1], Cout, Cout, t),   # inverted_residuals_list[0]
        "block2": init_block_params(kb[2], Cout, Cout, t),   # inverted_residuals_list[1]
    }
    use_res0 = (stride == 1 and Cin == Cout)                 # False here (4 != 8)

    w_slab, b_slab, dw_slab, layout = pack_params(params, N, H, W)

    fwd = jax.jit(functools.partial(big_residual_forward,
                                    layout=layout, use_res0=use_res0))
    out = jax.block_until_ready(fwd(x, w_slab, b_slab, dw_slab))

    ref = ref_forward(x, params, use_res0)
    assert out.shape == (N, Cout, H, W), out.shape
    max_err = float(jnp.max(jnp.abs(out - ref)))
    assert jnp.allclose(out, ref, atol=1e-3, rtol=1e-3), max_err
    print("KERNEL_OK")
</pallas_src>

<mosaic_0001>
module attributes {stable_mosaic.version = 11 : i64} {
  func.func @_big_residual_kernel(%arg0: memref<4x512xf32, #tpu.memory_space<vmem>>, %arg1: memref<64x16xf32, #tpu.memory_space<vmem>>, %arg2: memref<104x1xf32, #tpu.memory_space<vmem>>, %arg3: memref<360x512xf32, #tpu.memory_space<vmem>>, %arg4: memref<8x512xf32, #tpu.memory_space<vmem>>) attributes {dimension_semantics = [], scalar_prefetch = 0 : i64, scratch_operands = 0 : i64, tpu.core_type = #tpu.core_type<tc>} {
    %c0 = arith.constant 0 : index
    %c0_0 = arith.constant 0 : index
    %0 = vector.load %arg0[%c0, %c0_0] : memref<4x512xf32, #tpu.memory_space<vmem>>, vector<4x512xf32>
    %c0_1 = arith.constant 0 : index
    %c0_2 = arith.constant 0 : index
    %1 = vector.load %arg1[%c0_1, %c0_2] : memref<64x16xf32, #tpu.memory_space<vmem>>, vector<8x4xf32>
    %cst = arith.constant dense<0.000000e+00> : vector<8x512xf32>
    %2 = tpu.matmul %1, %0, %cst {dimension_numbers = #tpu.dot_dimension_numbers<[1], [0], [0], [1], [0, 0, 1, 1], [], []>} : vector<8x4xf32>, vector<4x512xf32>, vector<8x512xf32> -> vector<8x512xf32>
    %c0_3 = arith.constant 0 : index
    %c0_4 = arith.constant 0 : index
    %3 = vector.load %arg2[%c0_3, %c0_4] : memref<104x1xf32, #tpu.memory_space<vmem>>, vector<8x1xf32>
    %4 = vector.broadcast %3 : vector<8x1xf32> to vector<8x512xf32>
    %5 = arith.addf %2, %4 : vector<8x512xf32>
    %cst_5 = arith.constant 0.000000e+00 : f32
    %cst_6 = arith.constant 6.000000e+00 : f32
    %6 = vector.broadcast %cst_5 : f32 to vector<8x512xf32>
    %7 = arith.maximumf %6, %5 : vector<8x512xf32>
    %8 = vector.broadcast %cst_6 : f32 to vector<8x512xf32>
    %9 = arith.minimumf %8, %7 : vector<8x512xf32>
    %c17_i32 = arith.constant 17 : i32
    %10 = tpu.dynamic_rotate %9 by %c17_i32 dim 1 : vector<8x512xf32>, i32 -> vector<8x512xf32>
    %c0_7 = arith.constant 0 : index
    %c0_8 = arith.constant 0 : index
    %11 = vector.load %arg3[%c0_7, %c0_8] : memref<360x512xf32, #tpu.memory_space<vmem>>, vector<8x512xf32>
    %12 = arith.mulf %11, %10 : vector<8x512xf32>
    %c16_i32 = arith.constant 16 : i32
    %13 = tpu.dynamic_rotate %9 by %c16_i32 dim 1 : vector<8x512xf32>, i32 -> vector<8x512xf32>
    %c8 = arith.constant 8 : index
    %c0_9 = arith.constant 0 : index
    %14 = vector.load %arg3[%c8, %c0_9] : memref<360x512xf32, #tpu.memory_space<vmem>>, vector<8x512xf32>
    %15 = arith.mulf %14, %13 : vector<8x512xf32>
    %16 = arith.addf %12, %15 : vector<8x512xf32>
    %c15_i32 = arith.constant 15 : i32
    %17 = tpu.dynamic_rotate %9 by %c15_i32 dim 1 : vector<8x512xf32>, i32 -> vector<8x512xf32>
    %c16 = arith.constant 16 : index
    %c0_10 = arith.constant 0 : index
    %18 = vector.load %arg3[%c16, %c0_10] : memref<360x512xf32, #tpu.memory_space<vmem>>, vector<8x512xf32>
    %19 = arith.mulf %18, %17 : vector<8x512xf32>
    %20 = arith.addf %16, %19 : vector<8x512xf32>
    %c1_i32 = arith.constant 1 : i32
    %21 = tpu.dynamic_rotate %9 by %c1_i32 dim 1 : vector<8x512xf32>, i32 -> vector<8x512xf32>
    %c24 = arith.constant 24 : index
    %c0_11 = arith.constant 0 : index
    %22 = vector.load %arg3[%c24, %c0_11] : memref<360x512xf32, #tpu.memory_space<vmem>>, vector<8x512xf32>
    %23 = arith.mulf %22, %21 : vector<8x512xf32>
    %c32 = arith.constant 32 : index
    %c0_12 = arith.constant 0 : index
    %24 = vector.load %arg3[%c32, %c0_12] : memref<360x512xf32, #tpu.memory_space<vmem>>, vector<8x512xf32>
    %25 = arith.mulf %24, %9 : vector<8x512xf32>
    %26 = arith.addf %23, %25 : vector<8x512xf32>
    %c511_i32 = arith.constant 511 : i32
    %27 = tpu.dynamic_rotate %9 by %c511_i32 dim 1 : vector<8x512xf32>, i32 -> vector<8x512xf32>
    %c40 = arith.constant 40 : index
    %c0_13 = arith.constant 0 : index
    %28 = vector.load %arg3[%c40, %c0_13] : memref<360x512xf32, #tpu.memory_space<vmem>>, vector<8x512xf32>
    %29 = arith.mulf %28, %27 : vector<8x512xf32>
    %30 = arith.addf %26, %29 : vector<8x512xf32>
    %c497_i32 = arith.constant 497 : i32
    %31 = tpu.dynamic_rotate %9 by %c497_i32 dim 1 : vector<8x512xf32>, i32 -> vector<8x512xf32>
    %c48 = arith.constant 48 : index
    %c0_14 = arith.constant 0 : index
    %32 = vector.load %arg3[%c48, %c0_14] : memref<360x512xf32, #tpu.memory_space<vmem>>, vector<8x512xf32>
    %33 = arith.mulf %32, %31 : vector<8x512xf32>
    %c496_i32 = arith.constant 496 : i32
    %34 = tpu.dynamic_rotate %9 by %c496_i32 dim 1 : vector<8x512xf32>, i32 -> vector<8x512xf32>
    %c56 = arith.constant 56 : index
    %c0_15 = arith.constant 0 : index
    %35 = vector.load %arg3[%c56, %c0_15] : memref<360x512xf32, #tpu.memory_space<vmem>>, vector<8x512xf32>
    %36 = arith.mulf %35, %34 : vector<8x512xf32>
    %37 = arith.addf %33, %36 : vector<8x512xf32>
    %c495_i32 = arith.constant 495 : i32
    %38 = tpu.dynamic_rotate %9 by %c495_i32 dim 1 : vector<8x512xf32>, i32 -> vector<8x512xf32>
    %c64 = arith.constant 64 : index
    %c0_16 = arith.constant 0 : index
    %39 = vector.load %arg3[%c64, %c0_16] : memref<360x512xf32, #tpu.memory_space<vmem>>, vector<8x512xf32>
    %40 = arith.mulf %39, %38 : vector<8x512xf32>
    %41 = arith.addf %37, %40 : vector<8x512xf32>
    %42 = arith.addf %20, %30 : vector<8x512xf32>
    %43 = arith.addf %42, %41 : vector<8x512xf32>
    %c8_17 = arith.constant 8 : index
    %c0_18 = arith.constant 0 : index
    %44 = vector.load %arg2[%c8_17, %c0_18] : memref<104x1xf32, #tpu.memory_space<vmem>>, vector<8x1xf32>
    %45 = vector.broadcast %44 : vector<8x1xf32> to vector<8x512xf32>
    %46 = arith.addf %43, %45 : vector<8x512xf32>
    %cst_19 = arith.constant 0.000000e+00 : f32
    %cst_20 = arith.constant 6.000000e+00 : f32
    %47 = vector.broadcast %cst_19 : f32 to vector<8x512xf32>
    %48 = arith.maximumf %47, %46 : vector<8x512xf32>
    %49 = vector.broadcast %cst_20 : f32 to vector<8x512xf32>
    %50 = arith.minimumf %49, %48 : vector<8x512xf32>
    %c8_21 = arith.constant 8 : index
    %c0_22 = arith.constant 0 : index
    %51 = vector.load %arg1[%c8_21, %c0_22] : memref<64x16xf32, #tpu.memory_space<vmem>>, vector<8x8xf32>
    %cst_23 = arith.constant dense<0.000000e+00> : vector<8x512xf32>
    %52 = tpu.matmul %51, %50, %cst_23 {dimension_numbers = #tpu.dot_dimension_numbers<[1], [0], [0], [1], [0, 0, 1, 1], [], []>} : vector<8x8xf32>, vector<8x512xf32>, vector<8x512xf32> -> vector<8x512xf32>
    %c16_24 = arith.constant 16 : index
    %c0_25 = arith.constant 0 : index
    %53 = vector.load %arg2[%c16_24, %c0_25] : memref<104x1xf32, #tpu.memory_space<vmem>>, vector<8x1xf32>
    %54 = vector.broadcast %53 : vector<8x1xf32> to vector<8x512xf32>
    %55 = arith.addf %52, %54 : vector<8x512xf32>
    %c16_26 = arith.constant 16 : index
    %c0_27 = arith.constant 0 : index
    %56 = vector.load %arg1[%c16_26, %c0_27] : memref<64x16xf32, #tpu.memory_space<vmem>>, vector<16x8xf32>
    %cst_28 = arith.constant dense<0.000000e+00> : vector<16x512xf32>
    %57 = tpu.matmul %56, %55, %cst_28 {dimension_numbers = #tpu.dot_dimension_numbers<[1], [0], [0], [1], [0, 0, 1, 1], [], []>} : vector<16x8xf32>, vector<8x512xf32>, vector<16x512xf32> -> vector<16x512xf32>
    %c24_29 = arith.constant 24 : index
    %c0_30 = arith.constant 0 : index
    %58 = vector.load %arg2[%c24_29, %c0_30] : memref<104x1xf32, #tpu.memory_space<vmem>>, vector<16x1xf32>
    %59 = vector.broadcast %58 : vector<16x1xf32> to vector<16x512xf32>
    %60 = arith.addf %57, %59 : vector<16x512xf32>
    %cst_31 = arith.constant 0.000000e+00 : f32
    %cst_32 = arith.constant 6.000000e+00 : f32
    %61 = vector.broadcast %cst_31 : f32 to vector<16x512xf32>
    %62 = arith.maximumf %61, %60 : vector<16x512xf32>
    %63 = vector.broadcast %cst_32 : f32 to vector<16x512xf32>
    %64 = arith.minimumf %63, %62 : vector<16x512xf32>
    %c17_i32_33 = arith.constant 17 : i32
    %65 = tpu.dynamic_rotate %64 by %c17_i32_33 dim 1 : vector<16x512xf32>, i32 -> vector<16x512xf32>
    %c72 = arith.constant 72 : index
    %c0_34 = arith.constant 0 : index
    %66 = vector.load %arg3[%c72, %c0_34] : memref<360x512xf32, #tpu.memory_space<vmem>>, vector<16x512xf32>
    %67 = arith.mulf %66, %65 : vector<16x512xf32>
    %c16_i32_35 = arith.constant 16 : i32
    %68 = tpu.dynamic_rotate %64 by %c16_i32_35 dim 1 : vector<16x512xf32>, i32 -> vector<16x512xf32>
    %c88 = arith.constant 88 : index
    %c0_36 = arith.constant 0 : index
    %69 = vector.load %arg3[%c88, %c0_36] : memref<360x512xf32, #tpu.memory_space<vmem>>, vector<16x512xf32>
    %70 = arith.mulf %69, %68 : vector<16x512xf32>
    %71 = arith.addf %67, %70 : vector<16x512xf32>
    %c15_i32_37 = arith.constant 15 : i32
    %72 = tpu.dynamic_rotate %64 by %c15_i32_37 dim 1 : vector<16x512xf32>, i32 -> vector<16x512xf32>
    %c104 = arith.constant 104 : index
    %c0_38 = arith.constant 0 : index
    %73 = vector.load %arg3[%c104, %c0_38] : memref<360x512xf32, #tpu.memory_space<vmem>>, vector<16x512xf32>
    %74 = arith.mulf %73, %72 : vector<16x512xf32>
    %75 = arith.addf %71, %74 : vector<16x512xf32>
    %c1_i32_39 = arith.constant 1 : i32
    %76 = tpu.dynamic_rotate %64 by %c1_i32_39 dim 1 : vector<16x512xf32>, i32 -> vector<16x512xf32>
    %c120 = arith.constant 120 : index
    %c0_40 = arith.constant 0 : index
    %77 = vector.load %arg3[%c120, %c0_40] : memref<360x512xf32, #tpu.memory_space<vmem>>, vector<16x512xf32>
    %78 = arith.mulf %77, %76 : vector<16x512xf32>
    %c136 = arith.constant 136 : index
    %c0_41 = arith.constant 0 : index
    %79 = vector.load %arg3[%c136, %c0_41] : memref<360x512xf32, #tpu.memory_space<vmem>>, vector<16x512xf32>
    %80 = arith.mulf %79, %64 : vector<16x512xf32>
    %81 = arith.addf %78, %80 : vector<16x512xf32>
    %c511_i32_42 = arith.constant 511 : i32
    %82 = tpu.dynamic_rotate %64 by %c511_i32_42 dim 1 : vector<16x512xf32>, i32 -> vector<16x512xf32>
    %c152 = arith.constant 152 : index
    %c0_43 = arith.constant 0 : index
    %83 = vector.load %arg3[%c152, %c0_43] : memref<360x512xf32, #tpu.memory_space<vmem>>, vector<16x512xf32>
    %84 = arith.mulf %83, %82 : vector<16x512xf32>
    %85 = arith.addf %81, %84 : vector<16x512xf32>
    %c497_i32_44 = arith.constant 497 : i32
    %86 = tpu.dynamic_rotate %64 by %c497_i32_44 dim 1 : vector<16x512xf32>, i32 -> vector<16x512xf32>
    %c168 = arith.constant 168 : index
    %c0_45 = arith.constant 0 : index
    %87 = vector.load %arg3[%c168, %c0_45] : memref<360x512xf32, #tpu.memory_space<vmem>>, vector<16x512xf32>
    %88 = arith.mulf %87, %86 : vector<16x512xf32>
    %c496_i32_46 = arith.constant 496 : i32
    %89 = tpu.dynamic_rotate %64 by %c496_i32_46 dim 1 : vector<16x512xf32>, i32 -> vector<16x512xf32>
    %c184 = arith.constant 184 : index
    %c0_47 = arith.constant 0 : index
    %90 = vector.load %arg3[%c184, %c0_47] : memref<360x512xf32, #tpu.memory_space<vmem>>, vector<16x512xf32>
    %91 = arith.mulf %90, %89 : vector<16x512xf32>
    %92 = arith.addf %88, %91 : vector<16x512xf32>
    %c495_i32_48 = arith.constant 495 : i32
    %93 = tpu.dynamic_rotate %64 by %c495_i32_48 dim 1 : vector<16x512xf32>, i32 -> vector<16x512xf32>
    %c200 = arith.constant 200 : index
    %c0_49 = arith.constant 0 : index
    %94 = vector.load %arg3[%c200, %c0_49] : memref<360x512xf32, #tpu.memory_space<vmem>>, vector<16x512xf32>
    %95 = arith.mulf %94, %93 : vector<16x512xf32>
    %96 = arith.addf %92, %95 : vector<16x512xf32>
    %97 = arith.addf %75, %85 : vector<16x512xf32>
    %98 = arith.addf %97, %96 : vector<16x512xf32>
    %c40_50 = arith.constant 40 : index
    %c0_51 = arith.constant 0 : index
    %99 = vector.load %arg2[%c40_50, %c0_51] : memref<104x1xf32, #tpu.memory_space<vmem>>, vector<16x1xf32>
    %100 = vector.broadcast %99 : vector<16x1xf32> to vector<16x512xf32>
    %101 = arith.addf %98, %100 : vector<16x512xf32>
    %cst_52 = arith.constant 0.000000e+00 : f32
    %cst_53 = arith.constant 6.000000e+00 : f32
    %102 = vector.broadcast %cst_52 : f32 to vector<16x512xf32>
    %103 = arith.maximumf %102, %101 : vector<16x512xf32>
    %104 = vector.broadcast %cst_53 : f32 to vector<16x512xf32>
    %105 = arith.minimumf %104, %103 : vector<16x512xf32>
    %c32_54 = arith.constant 32 : index
    %c0_55 = arith.constant 0 : index
    %106 = vector.load %arg1[%c32_54, %c0_55] : memref<64x16xf32, #tpu.memory_space<vmem>>, vector<8x16xf32>
    %cst_56 = arith.constant dense<0.000000e+00> : vector<8x512xf32>
    %107 = tpu.matmul %106, %105, %cst_56 {dimension_numbers = #tpu.dot_dimension_numbers<[1], [0], [0], [1], [0, 0, 1, 1], [], []>} : vector<8x16xf32>, vector<16x512xf32>, vector<8x512xf32> -> vector<8x512xf32>
    %c56_57 = arith.constant 56 : index
    %c0_58 = arith.constant 0 : index
    %108 = vector.load %arg2[%c56_57, %c0_58] : memref<104x1xf32, #tpu.memory_space<vmem>>, vector<8x1xf32>
    %109 = vector.broadcast %108 : vector<8x1xf32> to vector<8x512xf32>
    %110 = arith.addf %107, %109 : vector<8x512xf32>
    %111 = arith.addf %110, %55 : vector<8x512xf32>
    %c40_59 = arith.constant 40 : index
    %c0_60 = arith.constant 0 : index
    %112 = vector.load %arg1[%c40_59, %c0_60] : memref<64x16xf32, #tpu.memory_space<vmem>>, vector<16x8xf32>
    %cst_61 = arith.constant dense<0.000000e+00> : vector<16x512xf32>
    %113 = tpu.matmul %112, %111, %cst_61 {dimension_numbers = #tpu.dot_dimension_numbers<[1], [0], [0], [1], [0, 0, 1, 1], [], []>} : vector<16x8xf32>, vector<8x512xf32>, vector<16x512xf32> -> vector<16x512xf32>
    %c64_62 = arith.constant 64 : index
    %c0_63 = arith.constant 0 : index
    %114 = vector.load %arg2[%c64_62, %c0_63] : memref<104x1xf32, #tpu.memory_space<vmem>>, vector<16x1xf32>
    %115 = vector.broadcast %114 : vector<16x1xf32> to vector<16x512xf32>
    %116 = arith.addf %113, %115 : vector<16x512xf32>
    %cst_64 = arith.constant 0.000000e+00 : f32
    %cst_65 = arith.constant 6.000000e+00 : f32
    %117 = vector.broadcast %cst_64 : f32 to vector<16x512xf32>
    %118 = arith.maximumf %117, %116 : vector<16x512xf32>
    %119 = vector.broadcast %cst_65 : f32 to vector<16x512xf32>
    %120 = arith.minimumf %119, %118 : vector<16x512xf32>
    %c17_i32_66 = arith.constant 17 : i32
    %121 = tpu.dynamic_rotate %120 by %c17_i32_66 dim 1 : vector<16x512xf32>, i32 -> vector<16x512xf32>
    %c216 = arith.constant 216 : index
    %c0_67 = arith.constant 0 : index
    %122 = vector.load %arg3[%c216, %c0_67] : memref<360x512xf32, #tpu.memory_space<vmem>>, vector<16x512xf32>
    %123 = arith.mulf %122, %121 : vector<16x512xf32>
    %c16_i32_68 = arith.constant 16 : i32
    %124 = tpu.dynamic_rotate %120 by %c16_i32_68 dim 1 : vector<16x512xf32>, i32 -> vector<16x512xf32>
    %c232 = arith.constant 232 : index
    %c0_69 = arith.constant 0 : index
    %125 = vector.load %arg3[%c232, %c0_69] : memref<360x512xf32, #tpu.memory_space<vmem>>, vector<16x512xf32>
    %126 = arith.mulf %125, %124 : vector<16x512xf32>
    %127 = arith.addf %123, %126 : vector<16x512xf32>
    %c15_i32_70 = arith.constant 15 : i32
    %128 = tpu.dynamic_rotate %120 by %c15_i32_70 dim 1 : vector<16x512xf32>, i32 -> vector<16x512xf32>
    %c248 = arith.constant 248 : index
    %c0_71 = arith.constant 0 : index
    %129 = vector.load %arg3[%c248, %c0_71] : memref<360x512xf32, #tpu.memory_space<vmem>>, vector<16x512xf32>
    %130 = arith.mulf %129, %128 : vector<16x512xf32>
    %131 = arith.addf %127, %130 : vector<16x512xf32>
    %c1_i32_72 = arith.constant 1 : i32
    %132 = tpu.dynamic_rotate %120 by %c1_i32_72 dim 1 : vector<16x512xf32>, i32 -> vector<16x512xf32>
    %c264 = arith.constant 264 : index
    %c0_73 = arith.constant 0 : index
    %133 = vector.load %arg3[%c264, %c0_73] : memref<360x512xf32, #tpu.memory_space<vmem>>, vector<16x512xf32>
    %134 = arith.mulf %133, %132 : vector<16x512xf32>
    %c280 = arith.constant 280 : index
    %c0_74 = arith.constant 0 : index
    %135 = vector.load %arg3[%c280, %c0_74] : memref<360x512xf32, #tpu.memory_space<vmem>>, vector<16x512xf32>
    %136 = arith.mulf %135, %120 : vector<16x512xf32>
    %137 = arith.addf %134, %136 : vector<16x512xf32>
    %c511_i32_75 = arith.constant 511 : i32
    %138 = tpu.dynamic_rotate %120 by %c511_i32_75 dim 1 : vector<16x512xf32>, i32 -> vector<16x512xf32>
    %c296 = arith.constant 296 : index
    %c0_76 = arith.constant 0 : index
    %139 = vector.load %arg3[%c296, %c0_76] : memref<360x512xf32, #tpu.memory_space<vmem>>, vector<16x512xf32>
    %140 = arith.mulf %139, %138 : vector<16x512xf32>
    %141 = arith.addf %137, %140 : vector<16x512xf32>
    %c497_i32_77 = arith.constant 497 : i32
    %142 = tpu.dynamic_rotate %120 by %c497_i32_77 dim 1 : vector<16x512xf32>, i32 -> vector<16x512xf32>
    %c312 = arith.constant 312 : index
    %c0_78 = arith.constant 0 : index
    %143 = vector.load %arg3[%c312, %c0_78] : memref<360x512xf32, #tpu.memory_space<vmem>>, vector<16x512xf32>
    %144 = arith.mulf %143, %142 : vector<16x512xf32>
    %c496_i32_79 = arith.constant 496 : i32
    %145 = tpu.dynamic_rotate %120 by %c496_i32_79 dim 1 : vector<16x512xf32>, i32 -> vector<16x512xf32>
    %c328 = arith.constant 328 : index
    %c0_80 = arith.constant 0 : index
    %146 = vector.load %arg3[%c328, %c0_80] : memref<360x512xf32, #tpu.memory_space<vmem>>, vector<16x512xf32>
    %147 = arith.mulf %146, %145 : vector<16x512xf32>
    %148 = arith.addf %144, %147 : vector<16x512xf32>
    %c495_i32_81 = arith.constant 495 : i32
    %149 = tpu.dynamic_rotate %120 by %c495_i32_81 dim 1 : vector<16x512xf32>, i32 -> vector<16x512xf32>
    %c344 = arith.constant 344 : index
    %c0_82 = arith.constant 0 : index
    %150 = vector.load %arg3[%c344, %c0_82] : memref<360x512xf32, #tpu.memory_space<vmem>>, vector<16x512xf32>
    %151 = arith.mulf %150, %149 : vector<16x512xf32>
    %152 = arith.addf %148, %151 : vector<16x512xf32>
    %153 = arith.addf %131, %141 : vector<16x512xf32>
    %154 = arith.addf %153, %152 : vector<16x512xf32>
    %c80 = arith.constant 80 : index
    %c0_83 = arith.constant 0 : index
    %155 = vector.load %arg2[%c80, %c0_83] : memref<104x1xf32, #tpu.memory_space<vmem>>, vector<16x1xf32>
    %156 = vector.broadcast %155 : vector<16x1xf32> to vector<16x512xf32>
    %157 = arith.addf %154, %156 : vector<16x512xf32>
    %cst_84 = arith.constant 0.000000e+00 : f32
    %cst_85 = arith.constant 6.000000e+00 : f32
    %158 = vector.broadcast %cst_84 : f32 to vector<16x512xf32>
    %159 = arith.maximumf %158, %157 : vector<16x512xf32>
    %160 = vector.broadcast %cst_85 : f32 to vector<16x512xf32>
    %161 = arith.minimumf %160, %159 : vector<16x512xf32>
    %c56_86 = arith.constant 56 : index
    %c0_87 = arith.constant 0 : index
    %162 = vector.load %arg1[%c56_86, %c0_87] : memref<64x16xf32, #tpu.memory_space<vmem>>, vector<8x16xf32>
    %cst_88 = arith.constant dense<0.000000e+00> : vector<8x512xf32>
    %163 = tpu.matmul %162, %161, %cst_88 {dimension_numbers = #tpu.dot_dimension_numbers<[1], [0], [0], [1], [0, 0, 1, 1], [], []>} : vector<8x16xf32>, vector<16x512xf32>, vector<8x512xf32> -> vector<8x512xf32>
    %c96 = arith.constant 96 : index
    %c0_89 = arith.constant 0 : index
    %164 = vector.load %arg2[%c96, %c0_89] : memref<104x1xf32, #tpu.memory_space<vmem>>, vector<8x1xf32>
    %165 = vector.broadcast %164 : vector<8x1xf32> to vector<8x512xf32>
    %166 = arith.addf %163, %165 : vector<8x512xf32>
    %167 = arith.addf %166, %111 : vector<8x512xf32>
    %168 = arith.addf %167, %55 : vector<8x512xf32>
    %c0_90 = arith.constant 0 : index
    %c0_91 = arith.constant 0 : index
    %169 = vector.load %arg4[%c0_90, %c0_91] : memref<8x512xf32, #tpu.memory_space<vmem>>, vector<8x512xf32>
    tpu.vector_store %arg4[%c0_90, %c0_91], %168 {strides = array<i32>} : memref<8x512xf32, #tpu.memory_space<vmem>>, vector<8x512xf32>,
    return
  }
}

</mosaic_0001>

<bundles_post_ra>
// kernel: big_residual_forward.1
= control target key start
LH: loop header
LB: loop body
LE: loop exit
PB: predicated region body
PF: predicated region fallthrough
CT: control target
= control target key end

     0   :  { %9 = vsyncpa [#allocation3], 0  ;;  %s1878_s18 = smov [#allocation2]   ;;  %s1879_s20 = smov 512   ;;  %s3256_s0 = inlined_call_operand.vmem [shape: f32[4,512], index: 0, kind: input, shape index: {}]   ;;  %s3257_s1 = inlined_call_operand.vmem [shape: f32[64,16], index: 1, kind: input, shape index: {}]   ;;  %s3258_s2 = inlined_call_operand.vmem [shape: f32[104,1], index: 2, kind: input, shape index: {}]   ;;  %s3259_s3 = inlined_call_operand.hbm [shape: f32[360,512], index: 3, kind: input, shape index: {}]   ;;  %s3260_s4 = inlined_call_operand.vmem [shape: f32[8,512], index: 4, kind: output, shape index: {}]  }
   0x1   :  { %s20_s17 = sshll.u32 %s3259_s3, 4  ;;  %s22_s19 = sshll.u32 %s1878_s18, 4  ;;  %s21_s17 = int_to_ptr.hbm [resolvable:$true] %s20_s17  ;;  %s23_s19 = int_to_ptr.vmem [resolvable:$true] %s22_s19 }
   0x2   :  { %s1880_s21 = smov 32  }
   0x3   :  { %28 = dma.hbm_to_vmem [thread:$0]  %s21_s17, 23040, %s23_s19, [#allocation3], %s1879_s20, %s1879_s20, %s1880_s21  }
   0x4   :  { %1876 = dma.done.wait [#allocation3], 23040  }
   0x5   :  { %1877 = vsyncadd [#allocation3], 4294944256  ;;  %v1881_v0 = vmov 0   ;;  %v33_v1 = vld [vmem:[%s3256_s0] sm:$0xff]  ;;  %v34_v2 = vld [vmem:[%s3256_s0 + $0x8] sm:$0xff]  ;;  %vm55_vm0 = vcmask 1043456   ;;  %v160_v50 = vlaneseq }
   0x6   :  { %1849 = vset.pattern.permute.xlu0 %v1881_v0  ;;  %1850 = vset.pattern.permute.xlu1 %v1881_v0  ;;  %44 = vst [vmem:[#allocation1] ss:$2 sm:$0xff] %v33_v1  ;;  %v36_v3 = vld [vmem:[%s3258_s2] sm:$0xff]  ;;  %v362_v4 = vld [vmem:[%s3258_s2 + $0x8] sm:$0xff]  ;;  %vm51_vm1 = vcmask 31744   ;;  %s1882_s0 = smov 1  }
   0x7   :  { %1851 = vset.pattern.permute.xlu2 %v1881_v0  ;;  %46 = vst [vmem:[#allocation1 + $0x10] ss:$2 sm:$0xff] %v34_v2  ;;  %39 = vperm.xlu0 %1849, %v36_v3   ;;  %v35_v5 = vld [vmem:[%s3257_s1] sm:$0xff]  ;;  %s1883_s5 = smov 16   ;;  %s1884_s6 = smov 17   ;;  %v381_v27 = vld [vmem:[%s3258_s2 + $0x10] sm:$0xff] }
   0x8   :  { %365 = vperm.xlu1 %1850, %v362_v4   ;;  %s1885_s7 = smov 15   ;;  %s1886_s8 = smov 127   ;;  %v1000_v28 = vld [vmem:[%s3258_s2 + $0x30] sm:$0xff]  ;;  %v473_v29 = vld [vmem:[%s3258_s2 + $0x18] sm:$0xff]  ;;  %v2048_v52 = vand.u32 127, %v160_v50  ;;  %v191_v0 = vld [vmem:[#allocation2 + $0x38] sm:$0xff] }
   0x9   :  { %s1887_s9 = smov 113   ;;  %s1888_s10 = smov 112   ;;  %v248_v55 = vld [vmem:[#allocation2 + $0x90] sm:$0xff]  ;;  %v170_v2 = vld [vmem:[#allocation2 + $0x18] sm:$0xff]  ;;  %vm387_vm10 = vcmask 64512   ;;  %vm1042_vm11 = vcmask 130048  }
   0xa   :  { %s1889_s11 = smov 111   ;;  %vm183_vm2 = vcmp.lt.s32.totalorder %v2048_v52, 16  ;;  %vm233_vm3 = vcmp.lt.s32.totalorder %v2048_v52, 1  ;;  %vm162_vm4 = vcmp.lt.s32.totalorder %v2048_v52, 17  ;;  %v169_v56 = vld [vmem:[#allocation2 + $0x10] sm:$0xff]  ;;  %vm208_vm5 = vcmp.lt.s32.totalorder %v2048_v52, 15 }
   0xb   :  { %v190_v58 = vld [vmem:[#allocation2 + $0x30] sm:$0xff]  ;;  %vm266_vm6 = vcmp.lt.s32.totalorder %v2048_v52, 127  ;;  %v241_v4 = vld [vmem:[#allocation2 + $0x78] sm:$0xff]  ;;  %vm312_vm7 = vcmp.lt.s32.totalorder %v2048_v52, 112  ;;  %vm291_vm8 = vcmp.lt.s32.totalorder %v2048_v52, 113  ;;  %vm337_vm9 = vcmp.lt.s32.totalorder %v2048_v52, 111 }
   0xc   :  { %v240_v60 = vld [vmem:[#allocation2 + $0x70] sm:$0xff] }
   0xd   :  { %v47_v6 = vld.sshfl [vmem:[#allocation1] sm:$0xff pattern:$0x75316420]  ;;  %v48_v7 = vld.sshfl [vmem:[#allocation1 + $0x8] sm:$0xff pattern:$0x75316420] }
   0xe   :  { %1801 = vmatpush.msk.msra.mxu0 %vm55_vm0, %v47_v6  ;;  %1803 = vmatpush.msk.msra.mxu1 %vm55_vm0, %v48_v7  ;;  %v49_v8 = vld.sshfl [vmem:[#allocation1 + $0x10] sm:$0xff pattern:$0x75316420]  ;;  %v50_v9 = vld.sshfl [vmem:[#allocation1 + $0x18] sm:$0xff pattern:$0x75316420] }
   0xf   :  { %1805 = vmatpush.msk.msra.mxu2 %vm55_vm0, %v49_v8  ;;  %1807 = vmatpush.msk.msra.mxu3 %vm55_vm0, %v50_v9 }
  0x10   :  { %1802 = vmatmul.msk.f32.vlgmr.msra.gmra.mxu0 %vm51_vm1, %v35_v5  ;;  %1804 = vmatmul.msk.f32.vlgmr.msra.gmra.mxu1 %vm51_vm1, %v35_v5 }
  0x11   :  { %1806 = vmatmul.msk.f32.vlgmr.msra.gmra.mxu2 %vm51_vm1, %v35_v5  ;;  %1808 = vmatmul.msk.f32.vlgmr.msra.gmra.mxu3 %vm51_vm1, %v35_v5 }
  0x79   :  { %v40_v10 = vpop.permute.xlu0 %39 }
  0x7a   :  { %v2018_v32 = vpop.permute.xlu1 %365 }
  0x8d   :  { %v101_v11 = vpop.f32.mrf.mxu1  ;;  %v81_v13 = vpop.f32.mrf.mxu0 }
  0x8e   :  { %v102_v12 = vadd.f32 %v101_v11, %v40_v10  ;;  %v82_v15 = vadd.f32 %v81_v13, %v40_v10  ;;  %v215_v11 = vld [vmem:[#allocation2 + $0x50] sm:$0xff]  ;;  %v249_v13 = vld [vmem:[#allocation2 + $0x98] sm:$0xff] }
  0x90   :  { %v145_v14 = vmax.f32 %v102_v12, 0.0  ;;  %v144_v17 = vmax.f32 %v82_v15, 0.0  ;;  %v273_v15 = vld [vmem:[#allocation2 + $0xb0] sm:$0xff] }
  0x92   :  { %v1933_v16 = vmin.f32 %v145_v14, 6.0  ;;  %v1941_v20 = vmin.f32 %v144_v17, 6.0  ;;  %v274_v17 = vld [vmem:[#allocation2 + $0xb8] sm:$0xff] }
  0x94   :  { %227 = vrot.lane.b32.xlu1 %v1933_v16, %s1882_s0  ;;  %177 = vrot.lane.b32.xlu2 %v1933_v16, %s1883_s5  ;;  %v121_v18 = vpop.f32.mrf.mxu2  ;;  %v141_v19 = vpop.f32.mrf.mxu3 }
  0x95   :  { %154 = vrot.lane.b32.xlu0 %v1933_v16, %s1884_s6  ;;  %v122_v21 = vadd.f32 %v121_v18, %v40_v10  ;;  %v142_v22 = vadd.f32 %v141_v19, %v40_v10 }
  0x97   :  { %v146_v23 = vmax.f32 %v122_v21, 0.0  ;;  %v147_v24 = vmax.f32 %v142_v22, 0.0 }
  0x99   :  { %v1949_v25 = vmin.f32 %v146_v23, 6.0  ;;  %v1951_v26 = vmin.f32 %v147_v24, 6.0  ;;  %v216_v23 = vld [vmem:[#allocation2 + $0x58] sm:$0xff] }
  0x9b   :  { %v252_v63 = vmul.f32 %v248_v55, %v1949_v25 }
  0x9c   :  { %202 = vrot.lane.b32.xlu1 %v1933_v16, %s1885_s7  ;;  %152 = vrot.lane.b32.xlu2 %v1941_v20, %s1884_s6 }
  0x9d   :  { %175 = vrot.lane.b32.xlu0 %v1941_v20, %s1883_s5 }
  0xa4   :  { %179 = vrot.lane.b32.xlu2 %v1949_v25, %s1883_s5  ;;  %258 = vrot.lane.b32.xlu1 %v1941_v20, %s1886_s8 }
  0xa5   :  { %181 = vrot.lane.b32.xlu0 %v1951_v26, %s1883_s5 }
  0xac   :  { %229 = vrot.lane.b32.xlu2 %v1949_v25, %s1882_s0  ;;  %283 = vrot.lane.b32.xlu1 %v1941_v20, %s1887_s9 }
  0xad   :  { %231 = vrot.lane.b32.xlu0 %v1951_v26, %s1882_s0 }
  0xb4   :  { %204 = vrot.lane.b32.xlu2 %v1949_v25, %s1885_s7  ;;  %304 = vrot.lane.b32.xlu1 %v1941_v20, %s1888_s10 }
  0xb5   :  { %206 = vrot.lane.b32.xlu0 %v1951_v26, %s1885_s7 }
  0xbc   :  { %262 = vrot.lane.b32.xlu2 %v1949_v25, %s1886_s8  ;;  %329 = vrot.lane.b32.xlu1 %v1941_v20, %s1889_s11 }
  0xbd   :  { %264 = vrot.lane.b32.xlu0 %v1951_v26, %s1886_s8 }
  0xc4   :  { %287 = vrot.lane.b32.xlu2 %v1949_v25, %s1887_s9  ;;  %156 = vrot.lane.b32.xlu1 %v1949_v25, %s1884_s6 }
  0xc5   :  { %289 = vrot.lane.b32.xlu0 %v1951_v26, %s1887_s9 }
  0xcc   :  { %308 = vrot.lane.b32.xlu2 %v1949_v25, %s1888_s10  ;;  %158 = vrot.lane.b32.xlu1 %v1951_v26, %s1884_s6 }
  0xcd   :  { %310 = vrot.lane.b32.xlu0 %v1951_v26, %s1888_s10 }
  0xd4   :  { %333 = vrot.lane.b32.xlu2 %v1949_v25, %s1889_s11  ;;  %225 = vrot.lane.b32.xlu1 %v1941_v20, %s1882_s0  ;;  %v319_v25 = vld [vmem:[#allocation2 + $0xf0] sm:$0xff] }
  0xd5   :  { %335 = vrot.lane.b32.xlu0 %v1951_v26, %s1889_s11 }
  0xdc   :  { %200 = vrot.lane.b32.xlu2 %v1941_v20, %s1885_s7  ;;  %285 = vrot.lane.b32.xlu1 %v1933_v16, %s1887_s9 }
  0xdd   :  { %260 = vrot.lane.b32.xlu0 %v1933_v16, %s1886_s8 }
  0xe4   :  { %306 = vrot.lane.b32.xlu2 %v1933_v16, %s1888_s10  ;;  %384 = vperm.xlu1 %1850, %v381_v27   ;;  %v320_v27 = vld [vmem:[#allocation2 + $0xf8] sm:$0xff] }
  0xe5   :  { %331 = vrot.lane.b32.xlu0 %v1933_v16, %s1889_s11 }
  0xec   :  { %1008 = vperm.xlu1 %1850, %v1000_v28  }
  0xed   :  { %477 = vperm.xlu0 %1849, %v473_v29  }
  0xee   :  { %v2014_v30 = vpop.permute.xlu2 %177 }
  0xf6   :  { %v2016_v31 = vpop.permute.xlu2 %152 }
  0xfe   :  { %v180_v33 = vpop.permute.xlu2 %179 }
  0xff   :  { %v185_v59 = vsel %vm183_vm2, %v2014_v30, %v180_v33 }
 0x100   :  { %v194_v9 = vmul.f32 %v190_v58, %v185_v59 }
 0x106   :  { %v2020_v34 = vpop.permute.xlu1 %227  ;;  %v230_v36 = vpop.permute.xlu2 %229 }
 0x107   :  { %v2022_v35 = vpop.permute.xlu0 %154  ;;  %v235_v61 = vsel %vm233_vm3, %v2020_v34, %v230_v36 }
 0x108   :  { %v244_v10 = vmul.f32 %v240_v60, %v235_v61 }
 0x10e   :  { %v2024_v37 = vpop.permute.xlu1 %202  ;;  %v205_v39 = vpop.permute.xlu2 %204 }
 0x10f   :  { %v2026_v38 = vpop.permute.xlu0 %175  ;;  %v210_v12 = vsel %vm208_vm5, %v2024_v37, %v205_v39 }
 0x116   :  { %v2028_v40 = vpop.permute.xlu1 %258  ;;  %v2034_v43 = vpop.permute.xlu2 %262 }
 0x117   :  { %v2030_v41 = vpop.permute.xlu0 %181 }
 0x118   :  { %v184_v1 = vsel %vm183_vm2, %v180_v33, %v2030_v41  ;;  %v219_v33 = vmul.f32 %v215_v11, %v210_v12 }
 0x119   :  { %v195_v14 = vmul.f32 %v191_v0, %v184_v1  ;;  %v344_v1 = vld [vmem:[#allocation2 + $0x110] sm:$0xff] }
 0x11e   :  { %v2032_v42 = vpop.permute.xlu1 %283  ;;  %v2042_v47 = vpop.permute.xlu2 %287 }
 0x11f   :  { %v2036_v44 = vpop.permute.xlu0 %231 }
 0x120   :  { %v234_v5 = vsel %vm233_vm3, %v230_v36, %v2036_v44  ;;  %v253_v36 = vmul.f32 %v249_v13, %v1951_v26  ;;  %v256_v26 = vadd.f32 %v252_v63, %v244_v10 }
 0x121   :  { %v245_v22 = vmul.f32 %v241_v4, %v234_v5 }
 0x123   :  { %v257_v0 = vadd.f32 %v253_v36, %v245_v22  ;;  %v168_v22 = vld [vmem:[#allocation2 + $0x8] sm:$0xff]  ;;  %v187_v36 = vsel %vm183_vm2, %v2030_v41, %v2026_v38 }
 0x126   :  { %v2038_v45 = vpop.permute.xlu1 %304  ;;  %v2046_v51 = vpop.permute.xlu2 %308 }
 0x127   :  { %v2040_v46 = vpop.permute.xlu0 %206 }
 0x128   :  { %v209_v24 = vsel %vm208_vm5, %v205_v39, %v2040_v46 }
 0x129   :  { %v220_v59 = vmul.f32 %v216_v23, %v209_v24  ;;  %v189_v23 = vld [vmem:[#allocation2 + $0x28] sm:$0xff] }
 0x12e   :  { %v2044_v48 = vpop.permute.xlu1 %329  ;;  %v2063_v62 = vpop.permute.xlu2 %333 }
 0x12f   :  { %v265_v49 = vpop.permute.xlu0 %264 }
 0x130   :  { %v267_v18 = vsel %vm266_vm6, %v2034_v43, %v265_v49  ;;  %v270_v19 = vsel %vm266_vm6, %v265_v49, %v2028_v40 }
 0x131   :  { %v278_v55 = vmul.f32 %v274_v17, %v270_v19  ;;  %v165_v19 = vsel %vm162_vm4, %v2016_v31, %v2022_v35 }
 0x133   :  { %v282_v13 = vadd.f32 %v278_v55, %v257_v0 }
 0x136   :  { %v157_v53 = vpop.permute.xlu1 %156 }
 0x137   :  { %v290_v54 = vpop.permute.xlu0 %289  ;;  %v164_v57 = vsel %vm162_vm4, %v2022_v35, %v157_v53 }
 0x138   :  { %v173_v6 = vmul.f32 %v169_v56, %v164_v57  ;;  %v298_v56 = vld [vmem:[#allocation2 + $0xd0] sm:$0xff]  ;;  %v299_v57 = vld [vmem:[#allocation2 + $0xd8] sm:$0xff]  ;;  %v292_v39 = vsel %vm291_vm8, %v2042_v47, %v290_v54  ;;  %v295_v58 = vsel %vm291_vm8, %v290_v54, %v2032_v42 }
 0x139   :  { %v302_v5 = vmul.f32 %v298_v56, %v292_v39 }
 0x13a   :  { %v198_v49 = vadd.f32 %v194_v9, %v173_v6  ;;  %v303_v6 = vmul.f32 %v299_v57, %v295_v58  ;;  %v172_v57 = vmul.f32 %v168_v22, %v165_v19  ;;  %v239_v58 = vld [vmem:[#allocation2 + $0x68] sm:$0xff] }
 0x13c   :  { %v223_v9 = vadd.f32 %v219_v33, %v198_v49  ;;  %v188_v33 = vld [vmem:[#allocation2 + $0x20] sm:$0xff] }
 0x13d   :  { %v167_v49 = vld [vmem:[#allocation2] sm:$0xff]  ;;  %v192_v41 = vmul.f32 %v188_v33, %v187_v36 }
 0x13e   :  { %v2070_v3 = vpop.permute.xlu1 %158 }
 0x13f   :  { %v311_v7 = vpop.permute.xlu0 %310  ;;  %v163_v8 = vsel %vm162_vm4, %v157_v53, %v2070_v3  ;;  %v277_v53 = vmul.f32 %v273_v15, %v267_v18  ;;  %v247_v18 = vld [vmem:[#allocation2 + $0x88] sm:$0xff] }
 0x140   :  { %v174_v21 = vmul.f32 %v170_v2, %v163_v8  ;;  %v313_v28 = vsel %vm312_vm7, %v2046_v51, %v311_v7  ;;  %v316_v29 = vsel %vm312_vm7, %v311_v7, %v2038_v45  ;;  %v345_v2 = vld [vmem:[#allocation2 + $0x118] sm:$0xff]  ;;  %v201_v7 = vpop.permute.xlu2 %200  ;;  %v251_v35 = vmul.f32 %v247_v18, %v1933_v16 }
 0x141   :  { %v323_v60 = vmul.f32 %v319_v25, %v313_v28  ;;  %v324_v61 = vmul.f32 %v320_v27, %v316_v29  ;;  %v281_v12 = vadd.f32 %v277_v53, %v256_v26  ;;  %v246_v27 = vld [vmem:[#allocation2 + $0x80] sm:$0xff] }
 0x142   :  { %v199_v50 = vadd.f32 %v195_v14, %v174_v21  ;;  %v186_v21 = vsel %vm183_vm2, %v2026_v38, %v2014_v30  ;;  %v166_v30 = vsel %vm162_vm4, %v2070_v3, %v2016_v31  ;;  %v250_v38 = vmul.f32 %v246_v27, %v1941_v20  ;;  %v343_v27 = vld [vmem:[#allocation2 + $0x108] sm:$0xff] }
 0x143   :  { %v327_v10 = vadd.f32 %v323_v60, %v302_v5  ;;  %v328_v14 = vadd.f32 %v324_v61, %v303_v6  ;;  %v356_v28 = vadd.f32 %v281_v12, %v223_v9  ;;  %v193_v39 = vmul.f32 %v189_v23, %v186_v21  ;;  %v297_v12 = vld [vmem:[#allocation2 + $0xc8] sm:$0xff] }
 0x144   :  { %v224_v11 = vadd.f32 %v220_v59, %v199_v50  ;;  %v238_v50 = vld [vmem:[#allocation2 + $0x60] sm:$0xff]  ;;  %v214_v59 = vld [vmem:[#allocation2 + $0x48] sm:$0xff]  ;;  %v211_v31 = vsel %vm208_vm5, %v201_v7, %v2024_v37  ;;  %v171_v26 = vmul.f32 %v167_v49, %v166_v30 }
 0x145   :  { %v218_v9 = vmul.f32 %v214_v59, %v211_v31  ;;  %v197_v23 = vadd.f32 %v193_v39, %v172_v57 }
 0x146   :  { %v226_v4 = vpop.permute.xlu1 %225  ;;  %v357_v29 = vadd.f32 %v282_v13, %v224_v11  ;;  %v296_v11 = vld [vmem:[#allocation2 + $0xc0] sm:$0xff] }
 0x147   :  { %v336_v8 = vpop.permute.xlu0 %335  ;;  %v237_v53 = vsel %vm233_vm3, %v2036_v44, %v226_v4  ;;  %v236_v16 = vsel %vm233_vm3, %v226_v4, %v2020_v34  ;;  %v213_v13 = vld [vmem:[#allocation2 + $0x40] sm:$0xff]  ;;  %v222_v36 = vadd.f32 %v218_v9, %v197_v23 }
 0x148   :  { %v338_v54 = vsel %vm337_vm9, %v2063_v62, %v336_v8  ;;  %v341_v63 = vsel %vm337_vm9, %v336_v8, %v2044_v48  ;;  %v242_v0 = vmul.f32 %v238_v50, %v237_v53  ;;  %v307_v4 = vpop.permute.xlu2 %306  ;;  %v243_v37 = vmul.f32 %v239_v58, %v236_v16 }
 0x149   :  { %v348_v15 = vmul.f32 %v344_v1, %v338_v54  ;;  %v349_v17 = vmul.f32 %v345_v2, %v341_v63  ;;  %v271_v1 = vld [vmem:[#allocation2 + $0xa0] sm:$0xff]  ;;  %v272_v2 = vld [vmem:[#allocation2 + $0xa8] sm:$0xff]  ;;  %v212_v8 = vsel %vm208_vm5, %v2040_v46, %v201_v7 }
 0x14a   :  { %v380_v46 = vld [vmem:[%s3257_s1 + $0x8] sm:$0xff]  ;;  %v254_v18 = vadd.f32 %v250_v38, %v242_v0  ;;  %v255_v19 = vadd.f32 %v251_v35, %v243_v37 }
 0x14b   :  { %v352_v24 = vadd.f32 %v348_v15, %v327_v10  ;;  %v353_v25 = vadd.f32 %v349_v17, %v328_v14  ;;  %v317_v7 = vld [vmem:[#allocation2 + $0xe0] sm:$0xff]  ;;  %v318_v15 = vld [vmem:[#allocation2 + $0xe8] sm:$0xff]  ;;  %v314_v17 = vsel %vm312_vm7, %v307_v4, %v2046_v51 }
 0x14d   :  { %v360_v55 = vadd.f32 %v356_v28, %v352_v24  ;;  %v361_v56 = vadd.f32 %v357_v29, %v353_v25  ;;  %v217_v24 = vmul.f32 %v213_v13, %v212_v8  ;;  %v342_v25 = vld [vmem:[#allocation2 + $0x100] sm:$0xff]  ;;  %v322_v28 = vmul.f32 %v318_v15, %v314_v17 }
 0x14e   :  { %v286_v60 = vpop.permute.xlu1 %285 }
 0x14f   :  { %v261_v3 = vpop.permute.xlu0 %260  ;;  %v370_v44 = vadd.f32 %v2018_v32, %v360_v55  ;;  %v371_v61 = vadd.f32 %v2018_v32, %v361_v56 }
 0x150   :  { %v268_v20 = vsel %vm266_vm6, %v261_v3, %v2034_v43  ;;  %v269_v34 = vsel %vm266_vm6, %v2028_v40, %v261_v3  ;;  %v293_v43 = vsel %vm291_vm8, %v286_v60, %v2042_v47  ;;  %v294_v40 = vsel %vm291_vm8, %v2032_v42, %v286_v60 }
 0x151   :  { %v374_v5 = vmax.f32 %v370_v44, 0.0  ;;  %v375_v6 = vmax.f32 %v371_v61, 0.0  ;;  %v275_v54 = vmul.f32 %v271_v1, %v269_v34  ;;  %v276_v63 = vmul.f32 %v272_v2, %v268_v20  ;;  %v999_v61 = vld [vmem:[%s3258_s2 + $0x28] sm:$0xff]  ;;  %v471_v20 = vld [vmem:[%s3257_s1 + $0x10] sm:$0xff] }
 0x152   :  { %v315_v47 = vsel %vm312_vm7, %v2038_v45, %v307_v4  ;;  %v196_v42 = vadd.f32 %v192_v41, %v171_v26  ;;  %v300_v21 = vmul.f32 %v296_v11, %v294_v40  ;;  %v301_v22 = vmul.f32 %v297_v12, %v293_v43 }
 0x153   :  { %v378_v10 = vmin.f32 %v374_v5, 6.0  ;;  %v379_v14 = vmin.f32 %v375_v6, 6.0  ;;  %v321_v51 = vmul.f32 %v317_v7, %v315_v47  ;;  %v279_v29 = vadd.f32 %v275_v54, %v254_v18  ;;  %v472_v6 = vld [vmem:[%s3257_s1 + $0x18] sm:$0xff] }
 0x154   :  { %v280_v33 = vadd.f32 %v276_v63, %v255_v19  ;;  %v221_v30 = vadd.f32 %v217_v24, %v196_v42  ;;  %v326_v53 = vadd.f32 %v322_v28, %v301_v22 }
 0x155   :  { %446 = vmatpush.msrb.mxu2 %v378_v10  ;;  %466 = vmatpush.msrb.mxu3 %v379_v14  ;;  %v325_v50 = vadd.f32 %v321_v51, %v300_v21 }
 0x156   :  { %1811 = vmatmul.msk.f32.vlgmr.msrb.gmra.mxu2 %vm387_vm10, %v380_v46  ;;  %1812 = vmatmul.msk.f32.vlgmr.msrb.gmra.mxu3 %vm387_vm10, %v380_v46  ;;  %v354_v58 = vadd.f32 %v279_v29, %v221_v30  ;;  %v355_v16 = vadd.f32 %v280_v33, %v222_v36 }
 0x157   :  { %v332_v45 = vpop.permute.xlu0 %331 }
 0x158   :  { %v339_v35 = vsel %vm337_vm9, %v332_v45, %v2063_v62  ;;  %v340_v49 = vsel %vm337_vm9, %v2044_v48, %v332_v45  ;;  %v474_v48 = vld [vmem:[%s3258_s2 + $0x20] sm:$0xff] }
 0x159   :  { %v346_v55 = vmul.f32 %v342_v25, %v340_v49  ;;  %v347_v56 = vmul.f32 %v343_v27, %v339_v35  ;;  %482 = vperm.xlu2 %1851, %v474_v48  }
 0x15b   :  { %v350_v57 = vadd.f32 %v346_v55, %v325_v50  ;;  %v351_v39 = vadd.f32 %v347_v56, %v326_v53 }
 0x15d   :  { %v358_v38 = vadd.f32 %v354_v58, %v350_v57  ;;  %v359_v41 = vadd.f32 %v355_v16, %v351_v39 }
 0x15f   :  { %v368_v59 = vadd.f32 %v2018_v32, %v358_v38  ;;  %v369_v31 = vadd.f32 %v2018_v32, %v359_v41  ;;  %v385_v32 = vpop.permute.xlu1 %384  ;;  %v478_v8 = vpop.permute.xlu0 %477 }
 0x161   :  { %v372_v62 = vmax.f32 %v368_v59, 0.0  ;;  %v373_v3 = vmax.f32 %v369_v31, 0.0  ;;  %1003 = vperm.xlu2 %1851, %v999_v61  }
 0x163   :  { %v376_v60 = vmin.f32 %v372_v62, 6.0  ;;  %v377_v44 = vmin.f32 %v373_v3, 6.0  ;;  %v625_v62 = vld [vmem:[#allocation2 + $0x130] sm:$0xff] }
 0x164   :  { %v665_v3 = vld [vmem:[#allocation2 + $0x170] sm:$0xff] }
 0x165   :  { %406 = vmatpush.msrb.mxu0 %v376_v60  ;;  %426 = vmatpush.msrb.mxu1 %v377_v44 }
 0x166   :  { %1809 = vmatmul.msk.f32.vlgmr.msrb.gmra.mxu0 %vm387_vm10, %v380_v46  ;;  %1810 = vmatmul.msk.f32.vlgmr.msrb.gmra.mxu1 %vm387_vm10, %v380_v46 }
 0x167   :  { %v2311_v55 = vpop.permute.xlu1 %1008 }
 0x1b3   :  { %v483_v10 = vpop.permute.xlu2 %482 }
 0x1bb   :  { %v2291_v36 = vpop.permute.xlu2 %1003 }
 0x1d9   :  { %v448_v26 = vpop.f32.mrf.mxu2  ;;  %v468_v0 = vpop.f32.mrf.mxu3 }
 0x1da   :  { %v2183_v1 = vadd.f32 %v448_v26, %v385_v32  ;;  %v2185_v2 = vadd.f32 %v468_v0, %v385_v32 }
 0x1dc   :  { %3278 = vst [vmem:[#allocation5_spill] sm:$0xff] %v2183_v1  ;;  %552 = vmatpush.msra.mxu2 %v2183_v1  ;;  %575 = vmatpush.msra.mxu3 %v2185_v2 }
 0x1dd   :  { %3279 = vst [vmem:[#allocation6_spill] sm:$0xff] %v2185_v2  ;;  %1817 = vmatmul.msk.f32.vlgmr.msra.gmra.mxu2 %vm387_vm10, %v471_v20  ;;  %1819 = vmatmul.msk.f32.vlgmr.msra.gmra.mxu3 %vm387_vm10, %v471_v20  ;;  %v629_v2 = vld [vmem:[#allocation2 + $0x150] sm:$0xff] }
 0x1e3   :  { %v408_v34 = vpop.f32.mrf.mxu0  ;;  %v428_v4 = vpop.f32.mrf.mxu1 }
 0x1e4   :  { %v2194_v37 = vadd.f32 %v408_v34, %v385_v32  ;;  %v2196_v5 = vadd.f32 %v428_v4, %v385_v32 }
 0x1e5   :  { %1818 = vmatmul.msk.f32.gmra.mxu2 %vm387_vm10, %v472_v6  ;;  %1820 = vmatmul.msk.f32.gmra.mxu3 %vm387_vm10, %v472_v6 }
 0x1e6   :  { %3280 = vst [vmem:[#allocation7_spill] sm:$0xff] %v2194_v37  ;;  %506 = vmatpush.msra.mxu0 %v2194_v37  ;;  %529 = vmatpush.msra.mxu1 %v2196_v5 }
 0x1e7   :  { %3281 = vst [vmem:[#allocation8_spill] sm:$0xff] %v2196_v5  ;;  %1813 = vmatmul.msk.f32.vlgmr.msra.gmra.mxu0 %vm387_vm10, %v471_v20  ;;  %1815 = vmatmul.msk.f32.vlgmr.msra.gmra.mxu1 %vm387_vm10, %v471_v20 }
 0x1ef   :  { %1816 = vmatmul.msk.f32.gmra.mxu1 %vm387_vm10, %v472_v6  ;;  %1814 = vmatmul.msk.f32.gmra.mxu0 %vm387_vm10, %v472_v6 }
 0x260   :  { %v554_v19 = vpop.f32.mrf.mxu2  ;;  %v577_v21 = vpop.f32.mrf.mxu3 }
 0x261   :  { %v555_v22 = vadd.f32 %v554_v19, %v478_v8  ;;  %v578_v23 = vadd.f32 %v577_v21, %v478_v8 }
 0x263   :  { %v585_v24 = vmax.f32 %v555_v22, 0.0  ;;  %v586_v25 = vmax.f32 %v578_v23, 0.0 }
 0x264   :  { %v508_v9 = vpop.f32.mrf.mxu0  ;;  %v531_v11 = vpop.f32.mrf.mxu1 }
 0x265   :  { %v509_v12 = vadd.f32 %v508_v9, %v478_v8  ;;  %v532_v43 = vadd.f32 %v531_v11, %v478_v8  ;;  %v2239_v27 = vmin.f32 %v585_v24, 6.0  ;;  %v2241_v51 = vmin.f32 %v586_v25, 6.0  ;;  %v713_v9 = vld [vmem:[#allocation2 + $0x1b0] sm:$0xff] }
 0x267   :  { %v583_v40 = vmax.f32 %v509_v12, 0.0  ;;  %v584_v13 = vmax.f32 %v532_v43, 0.0 }
 0x268   :  { %v557_v28 = vpop.f32.mrf.mxu2  ;;  %v580_v29 = vpop.f32.mrf.mxu3 }
 0x269   :  { %v2209_v54 = vmin.f32 %v583_v40, 6.0  ;;  %v2211_v63 = vmin.f32 %v584_v13, 6.0  ;;  %v558_v33 = vadd.f32 %v557_v28, %v483_v10  ;;  %v581_v45 = vadd.f32 %v580_v29, %v483_v10 }
 0x26b   :  { %603 = vrot.lane.b32.xlu1 %v2211_v63, %s1884_s6  ;;  %599 = vrot.lane.b32.xlu0 %v2209_v54, %s1884_s6  ;;  %v589_v35 = vmax.f32 %v558_v33, 0.0  ;;  %v590_v49 = vmax.f32 %v581_v45, 0.0 }
 0x26c   :  { %v534_v14 = vpop.f32.mrf.mxu1  ;;  %v511_v46 = vpop.f32.mrf.mxu0 }
 0x26d   :  { %v535_v7 = vadd.f32 %v534_v14, %v483_v10  ;;  %v512_v17 = vadd.f32 %v511_v46, %v483_v10  ;;  %v2293_v30 = vmin.f32 %v589_v35, 6.0  ;;  %v2295_v50 = vmin.f32 %v590_v49, 6.0  ;;  %v1036_v35 = vld [vmem:[%s3258_s2 + $0x38] sm:$0xff] }
 0x26f   :  { %v588_v15 = vmax.f32 %v535_v7, 0.0  ;;  %v587_v42 = vmax.f32 %v512_v17, 0.0  ;;  %v626_v7 = vld [vmem:[#allocation2 + $0x138] sm:$0xff] }
 0x270   :  { %v666_v17 = vld [vmem:[#allocation2 + $0x178] sm:$0xff] }
 0x271   :  { %v2217_v47 = vmin.f32 %v588_v15, 6.0  ;;  %v2225_v18 = vmin.f32 %v587_v42, 6.0 }
 0x273   :  { %853 = vrot.lane.b32.xlu2 %v2217_v47, %s1887_s9  ;;  %643 = vrot.lane.b32.xlu1 %v2211_v63, %s1883_s5 }
 0x274   :  { %735 = vrot.lane.b32.xlu0 %v2209_v54, %s1882_s0 }
 0x27b   :  { %739 = vrot.lane.b32.xlu1 %v2211_v63, %s1882_s0  ;;  %601 = vrot.lane.b32.xlu2 %v2225_v18, %s1884_s6 }
 0x27c   :  { %893 = vrot.lane.b32.xlu0 %v2217_v47, %s1888_s10 }
 0x283   :  { %691 = vrot.lane.b32.xlu1 %v2211_v63, %s1885_s7  ;;  %689 = vrot.lane.b32.xlu2 %v2225_v18, %s1885_s7 }
 0x284   :  { %641 = vrot.lane.b32.xlu0 %v2225_v18, %s1883_s5 }
 0x28b   :  { %607 = vrot.lane.b32.xlu2 %v2239_v27, %s1884_s6  ;;  %799 = vrot.lane.b32.xlu1 %v2209_v54, %s1886_s8 }
 0x28c   :  { %611 = vrot.lane.b32.xlu0 %v2241_v51, %s1884_s6 }
 0x293   :  { %647 = vrot.lane.b32.xlu2 %v2239_v27, %s1883_s5  ;;  %847 = vrot.lane.b32.xlu1 %v2209_v54, %s1887_s9 }
 0x294   :  { %651 = vrot.lane.b32.xlu0 %v2241_v51, %s1883_s5 }
 0x29b   :  { %743 = vrot.lane.b32.xlu2 %v2239_v27, %s1882_s0  ;;  %887 = vrot.lane.b32.xlu1 %v2209_v54, %s1888_s10 }
 0x29c   :  { %747 = vrot.lane.b32.xlu0 %v2241_v51, %s1882_s0 }
 0x2a3   :  { %695 = vrot.lane.b32.xlu2 %v2239_v27, %s1885_s7  ;;  %935 = vrot.lane.b32.xlu1 %v2209_v54, %s1889_s11 }
 0x2a4   :  { %699 = vrot.lane.b32.xlu0 %v2241_v51, %s1885_s7 }
 0x2ab   :  { %807 = vrot.lane.b32.xlu2 %v2239_v27, %s1886_s8  ;;  %639 = vrot.lane.b32.xlu1 %v2209_v54, %s1883_s5 }
 0x2ac   :  { %811 = vrot.lane.b32.xlu0 %v2241_v51, %s1886_s8 }
 0x2b3   :  { %855 = vrot.lane.b32.xlu2 %v2239_v27, %s1887_s9  ;;  %687 = vrot.lane.b32.xlu1 %v2209_v54, %s1885_s7 }
 0x2b4   :  { %859 = vrot.lane.b32.xlu0 %v2241_v51, %s1887_s9 }
 0x2bb   :  { %895 = vrot.lane.b32.xlu2 %v2239_v27, %s1888_s10  ;;  %605 = vrot.lane.b32.xlu1 %v2217_v47, %s1884_s6 }
 0x2bc   :  { %899 = vrot.lane.b32.xlu0 %v2241_v51, %s1888_s10 }
 0x2c3   :  { %943 = vrot.lane.b32.xlu2 %v2239_v27, %s1889_s11  ;;  %645 = vrot.lane.b32.xlu1 %v2217_v47, %s1883_s5 }
 0x2c4   :  { %947 = vrot.lane.b32.xlu0 %v2241_v51, %s1889_s11 }
 0x2cb   :  { %609 = vrot.lane.b32.xlu2 %v2293_v30, %s1884_s6  ;;  %741 = vrot.lane.b32.xlu1 %v2217_v47, %s1882_s0 }
 0x2cc   :  { %613 = vrot.lane.b32.xlu0 %v2295_v50, %s1884_s6 }
 0x2cd   :  { %v2303_v53 = vpop.permute.xlu2 %853 }
 0x2d3   :  { %649 = vrot.lane.b32.xlu2 %v2293_v30, %s1883_s5  ;;  %693 = vrot.lane.b32.xlu1 %v2217_v47, %s1885_s7 }
 0x2d4   :  { %653 = vrot.lane.b32.xlu0 %v2295_v50, %s1883_s5 }
 0x2d5   :  { %v2313_v56 = vpop.permute.xlu2 %601 }
 0x2db   :  { %745 = vrot.lane.b32.xlu2 %v2293_v30, %s1882_s0  ;;  %805 = vrot.lane.b32.xlu1 %v2217_v47, %s1886_s8 }
 0x2dc   :  { %749 = vrot.lane.b32.xlu0 %v2295_v50, %s1882_s0 }
 0x2dd   :  { %v604_v57 = vpop.permute.xlu1 %603  ;;  %v2321_v39 = vpop.permute.xlu2 %689 }
 0x2de   :  { %v600_v58 = vpop.permute.xlu0 %599 }
 0x2df   :  { %v2325_v16 = vsel %vm162_vm4, %v600_v58, %v604_v57 }
 0x2e3   :  { %697 = vrot.lane.b32.xlu2 %v2293_v30, %s1885_s7  ;;  %801 = vrot.lane.b32.xlu1 %v2225_v18, %s1886_s8 }
 0x2e4   :  { %701 = vrot.lane.b32.xlu0 %v2295_v50, %s1885_s7 }
 0x2e5   :  { %v2333_v38 = vpop.permute.xlu1 %643  ;;  %v608_v41 = vpop.permute.xlu2 %607 }
 0x2e6   :  { %v617_v59 = vsel %vm162_vm4, %v604_v57, %v608_v41  ;;  %v736_v31 = vpop.permute.xlu0 %735  ;;  %v714_v57 = vld [vmem:[#allocation2 + $0x1b8] sm:$0xff] }
 0x2e7   :  { %v633_v26 = vmul.f32 %v625_v62, %v617_v59  ;;  %v1133_v62 = vld [vmem:[%s3258_s2 + $0x48] sm:$0xff] }
 0x2eb   :  { %809 = vrot.lane.b32.xlu2 %v2293_v30, %s1886_s8  ;;  %849 = vrot.lane.b32.xlu1 %v2225_v18, %s1887_s9 }
 0x2ec   :  { %813 = vrot.lane.b32.xlu0 %v2295_v50, %s1886_s8 }
 0x2ed   :  { %v740_v60 = vpop.permute.xlu1 %739  ;;  %v648_v44 = vpop.permute.xlu2 %647 }
 0x2ee   :  { %v2345_v48 = vsel %vm233_vm3, %v736_v31, %v740_v60  ;;  %v657_v61 = vsel %vm183_vm2, %v2333_v38, %v648_v44  ;;  %v2350_v32 = vpop.permute.xlu0 %893 }
 0x2ef   :  { %v673_v0 = vmul.f32 %v665_v3, %v657_v61  ;;  %v761_v3 = vld [vmem:[#allocation2 + $0x1f0] sm:$0xff] }
 0x2f0   :  { %v777_v61 = vld [vmem:[#allocation2 + $0x230] sm:$0xff] }
 0x2f1   :  { %v681_v20 = vadd.f32 %v673_v0, %v633_v26  ;;  %v778_v26 = vld [vmem:[#allocation2 + $0x238] sm:$0xff] }
 0x2f3   :  { %857 = vrot.lane.b32.xlu2 %v2293_v30, %s1887_s9  ;;  %889 = vrot.lane.b32.xlu1 %v2225_v18, %s1888_s10 }
 0x2f4   :  { %861 = vrot.lane.b32.xlu0 %v2295_v50, %s1887_s9 }
 0x2f5   :  { %v2358_v34 = vpop.permute.xlu1 %691  ;;  %v744_v4 = vpop.permute.xlu2 %743 }
 0x2f6   :  { %v753_v6 = vsel %vm233_vm3, %v740_v60, %v744_v4  ;;  %v2362_v8 = vpop.permute.xlu0 %641  ;;  %v762_v60 = vld [vmem:[#allocation2 + $0x1f8] sm:$0xff] }
 0x2fb   :  { %897 = vrot.lane.b32.xlu2 %v2293_v30, %s1888_s10  ;;  %937 = vrot.lane.b32.xlu1 %v2225_v18, %s1889_s11 }
 0x2fc   :  { %901 = vrot.lane.b32.xlu0 %v2295_v50, %s1888_s10 }
 0x2fd   :  { %v696_v11 = vpop.permute.xlu2 %695  ;;  %v2370_v12 = vpop.permute.xlu1 %799 }
 0x2fe   :  { %v705_v43 = vsel %vm208_vm5, %v2358_v34, %v696_v11  ;;  %v612_v40 = vpop.permute.xlu0 %611 }
 0x2ff   :  { %v721_v13 = vmul.f32 %v713_v9, %v705_v43  ;;  %v615_v10 = vsel %vm162_vm4, %v608_v41, %v612_v40  ;;  %v621_v14 = vsel %vm162_vm4, %v612_v40, %v600_v58  ;;  %v769_v9 = vmul.f32 %v761_v3, %v753_v6  ;;  %v664_v40 = vld [vmem:[#allocation2 + $0x168] sm:$0xff] }
 0x300   :  { %v634_v22 = vmul.f32 %v626_v7, %v615_v10  ;;  %v786_v10 = vmul.f32 %v778_v26, %v2241_v51  ;;  %v712_v26 = vld [vmem:[#allocation2 + $0x1a8] sm:$0xff] }
 0x301   :  { %v2379_v46 = vadd.f32 %v721_v13, %v681_v20  ;;  %v624_v20 = vld [vmem:[#allocation2 + $0x128] sm:$0xff]  ;;  %v785_v13 = vmul.f32 %v777_v61, %v2239_v27  ;;  %v711_v61 = vld [vmem:[#allocation2 + $0x1a0] sm:$0xff] }
 0x303   :  { %945 = vrot.lane.b32.xlu2 %v2293_v30, %s1889_s11  ;;  %737 = vrot.lane.b32.xlu1 %v2225_v18, %s1882_s0 }
 0x304   :  { %949 = vrot.lane.b32.xlu0 %v2295_v50, %s1889_s11 }
 0x305   :  { %v2387_v15 = vpop.permute.xlu2 %807  ;;  %v2389_v42 = vpop.permute.xlu1 %847 }
 0x306   :  { %3282 = vst [vmem:[#allocation9_spill] sm:$0xff] %v2389_v42  ;;  %v652_v19 = vpop.permute.xlu0 %651 }
 0x307   :  { %v655_v21 = vsel %vm183_vm2, %v648_v44, %v652_v19  ;;  %v1132_v44 = vld [vmem:[%s3258_s2 + $0x40] sm:$0xff] }
 0x308   :  { %v674_v23 = vmul.f32 %v666_v17, %v655_v21  ;;  %v825_v17 = vld [vmem:[#allocation2 + $0x270] sm:$0xff]  ;;  %v826_v21 = vld [vmem:[#allocation2 + $0x278] sm:$0xff] }
 0x30a   :  { %v682_v24 = vadd.f32 %v674_v23, %v634_v22  ;;  %v632_v23 = vmul.f32 %v624_v20, %v2325_v16  ;;  %v793_v16 = vadd.f32 %v785_v13, %v769_v9 }
 0x30b   :  { %803 = vrot.lane.b32.xlu2 %v2211_v63, %s1886_s8  ;;  %891 = vrot.lane.b32.xlu1 %v2211_v63, %s1888_s10 }
 0x30c   :  { %851 = vrot.lane.b32.xlu0 %v2211_v63, %s1887_s9 }
 0x30d   :  { %v2399_v25 = vpop.permute.xlu2 %855  ;;  %v2401_v28 = vpop.permute.xlu1 %887 }
 0x30e   :  { %3283 = vst [vmem:[#allocation10_spill] sm:$0xff] %v2399_v25  ;;  %v748_v29 = vpop.permute.xlu0 %747 }
 0x30f   :  { %3284 = vst [vmem:[#allocation11_spill] sm:$0xff] %v2401_v28  ;;  %v751_v33 = vsel %vm233_vm3, %v744_v4, %v748_v29  ;;  %v2407_v45 = vsel %vm233_vm3, %v748_v29, %v736_v31  ;;  %v623_v4 = vld [vmem:[#allocation2 + $0x120] sm:$0xff] }
 0x310   :  { %v770_v43 = vmul.f32 %v762_v60, %v751_v33 }
 0x313   :  { %941 = vrot.lane.b32.xlu2 %v2217_v47, %s1889_s11  ;;  %1039 = vperm.xlu1 %1850, %v1036_v35  }
 0x314   :  { %939 = vrot.lane.b32.xlu0 %v2211_v63, %s1889_s11 }
 0x315   :  { %v2416_v49 = vpop.permute.xlu2 %895  ;;  %v2418_v58 = vpop.permute.xlu1 %935 }
 0x316   :  { %3285 = vst [vmem:[#allocation12_spill] sm:$0xff] %v2418_v58  ;;  %v700_v41 = vpop.permute.xlu0 %699 }
 0x317   :  { %v703_v59 = vsel %vm208_vm5, %v696_v11, %v700_v41  ;;  %v663_v11 = vld [vmem:[#allocation2 + $0x160] sm:$0xff] }
 0x318   :  { %v722_v31 = vmul.f32 %v714_v57, %v703_v59 }
 0x31a   :  { %v730_v0 = vadd.f32 %v722_v31, %v682_v24  ;;  %v631_v24 = vmul.f32 %v623_v4, %v621_v14  ;;  %v794_v14 = vadd.f32 %v786_v10, %v770_v43 }
 0x31b   :  { %1141 = vperm.xlu2 %1851, %v1133_v62  }
 0x31c   :  { %1136 = vperm.xlu0 %1849, %v1132_v44  }
 0x31d   :  { %v2430_v7 = vpop.permute.xlu2 %943  ;;  %v640_v22 = vpop.permute.xlu1 %639 }
 0x31e   :  { %3286 = vst [vmem:[#allocation13_spill] sm:$0xff] %v2430_v7  ;;  %v812_v29 = vpop.permute.xlu0 %811  ;;  %v659_v6 = vsel %vm183_vm2, %v640_v22, %v2333_v38  ;;  %v661_v33 = vsel %vm183_vm2, %v652_v19, %v640_v22 }
 0x31f   :  { %v815_v27 = vsel %vm266_vm6, %v2387_v15, %v812_v29  ;;  %v821_v51 = vsel %vm266_vm6, %v812_v29, %v2370_v12  ;;  %v671_v35 = vmul.f32 %v663_v11, %v661_v33  ;;  %v672_v57 = vmul.f32 %v664_v40, %v659_v6 }
 0x320   :  { %v833_v59 = vmul.f32 %v825_v17, %v815_v27  ;;  %v834_v31 = vmul.f32 %v826_v21, %v821_v51 }
 0x321   :  { %v679_v62 = vadd.f32 %v671_v35, %v631_v24  ;;  %v680_v3 = vadd.f32 %v672_v57, %v632_v23  ;;  %v913_v23 = vld [vmem:[#allocation2 + $0x2f0] sm:$0xff] }
 0x322   :  { %v841_v38 = vadd.f32 %v833_v59, %v793_v16  ;;  %v842_v60 = vadd.f32 %v834_v31, %v794_v14  ;;  %v628_v59 = vld [vmem:[#allocation2 + $0x148] sm:$0xff] }
 0x324   :  { %v985_v19 = vadd.f32 %v841_v38, %v2379_v46  ;;  %v986_v44 = vadd.f32 %v842_v60, %v730_v0  ;;  %v873_v46 = vld [vmem:[#allocation2 + $0x2b0] sm:$0xff]  ;;  %v874_v0 = vld [vmem:[#allocation2 + $0x2b8] sm:$0xff] }
 0x325   :  { %v2445_v20 = vpop.permute.xlu2 %609  ;;  %v688_v4 = vpop.permute.xlu1 %687  ;;  %v961_v38 = vld [vmem:[#allocation2 + $0x330] sm:$0xff]  ;;  %v962_v60 = vld [vmem:[#allocation2 + $0x338] sm:$0xff] }
 0x326   :  { %v860_v22 = vpop.permute.xlu0 %859  ;;  %v707_v9 = vsel %vm208_vm5, %v688_v4, %v2358_v34  ;;  %v709_v43 = vsel %vm208_vm5, %v700_v41, %v688_v4  ;;  %v914_v41 = vld [vmem:[#allocation2 + $0x2f8] sm:$0xff] }
 0x327   :  { %v719_v11 = vmul.f32 %v711_v61, %v709_v43  ;;  %v720_v40 = vmul.f32 %v712_v26, %v707_v9  ;;  %v863_v17 = vsel %vm291_vm8, %v2399_v25, %v860_v22  ;;  %v869_v21 = vsel %vm291_vm8, %v860_v22, %v2389_v42  ;;  %v824_v42 = vld [vmem:[#allocation2 + $0x268] sm:$0xff] }
 0x328   :  { %v881_v27 = vmul.f32 %v873_v46, %v863_v17  ;;  %v882_v51 = vmul.f32 %v874_v0, %v869_v21 }
 0x329   :  { %v2452_v13 = vadd.f32 %v719_v11, %v679_v62  ;;  %v2454_v10 = vadd.f32 %v720_v40, %v680_v3  ;;  %v668_v62 = vld [vmem:[#allocation2 + $0x188] sm:$0xff] }
 0x32d   :  { %v2462_v34 = vpop.permute.xlu2 %649  ;;  %v606_v24 = vpop.permute.xlu1 %605 }
 0x32e   :  { %v900_v29 = vpop.permute.xlu0 %899  ;;  %v620_v31 = vsel %vm162_vm4, %v2313_v56, %v606_v24  ;;  %v618_v1 = vsel %vm162_vm4, %v606_v24, %v2445_v20  ;;  %v716_v24 = vld [vmem:[#allocation2 + $0x1c8] sm:$0xff] }
 0x32f   :  { %v903_v6 = vsel %vm312_vm7, %v2416_v49, %v900_v29  ;;  %v909_v33 = vsel %vm312_vm7, %v900_v29, %v2401_v28  ;;  %v636_v22 = vmul.f32 %v628_v59, %v620_v31  ;;  %v765_v28 = vld [vmem:[#allocation2 + $0x210] sm:$0xff] }
 0x330   :  { %v921_v35 = vmul.f32 %v913_v23, %v903_v6  ;;  %v922_v57 = vmul.f32 %v914_v41, %v909_v33 }
 0x332   :  { %v929_v16 = vadd.f32 %v921_v35, %v881_v27  ;;  %v930_v14 = vadd.f32 %v922_v57, %v882_v51 }
 0x335   :  { %v2473_v3 = vpop.permute.xlu2 %745  ;;  %v646_v61 = vpop.permute.xlu1 %645 }
 0x336   :  { %v948_v26 = vpop.permute.xlu0 %947  ;;  %v660_v4 = vsel %vm183_vm2, %v2362_v8, %v646_v61 }
 0x337   :  { %v951_v9 = vsel %vm337_vm9, %v2430_v7, %v948_v26  ;;  %v957_v43 = vsel %vm337_vm9, %v948_v26, %v2418_v58  ;;  %v676_v11 = vmul.f32 %v668_v62, %v660_v4  ;;  %v776_v26 = vld [vmem:[#allocation2 + $0x228] sm:$0xff]  ;;  %v759_v4 = vld [vmem:[#allocation2 + $0x1e0] sm:$0xff] }
 0x338   :  { %v969_v40 = vmul.f32 %v961_v38, %v951_v9  ;;  %v970_v46 = vmul.f32 %v962_v60, %v957_v43  ;;  %v760_v38 = vld [vmem:[#allocation2 + $0x1e8] sm:$0xff]  ;;  %v669_v43 = vld [vmem:[#allocation2 + $0x190] sm:$0xff]  ;;  %v784_v5 = vmul.f32 %v776_v26, %v2211_v63  ;;  %v767_v37 = vmul.f32 %v759_v4, %v2407_v45  ;;  %v823_v7 = vld [vmem:[#allocation2 + $0x260] sm:$0xff] }
 0x339   :  { %v2484_v0 = vadd.f32 %v676_v11, %v636_v22  ;;  %v775_v22 = vld [vmem:[#allocation2 + $0x220] sm:$0xff]  ;;  %v768_v9 = vmul.f32 %v760_v38, %v2345_v48  ;;  %v658_v11 = vsel %vm183_vm2, %v646_v61, %v2462_v34 }
 0x33a   :  { %v977_v17 = vadd.f32 %v969_v40, %v929_v16  ;;  %v978_v21 = vadd.f32 %v970_v46, %v930_v14  ;;  %v781_v40 = vld [vmem:[#allocation2 + $0x250] sm:$0xff]  ;;  %v782_v46 = vld [vmem:[#allocation2 + $0x258] sm:$0xff]  ;;  %v783_v48 = vmul.f32 %v775_v22, %v2209_v54  ;;  %v677_v38 = vmul.f32 %v669_v43, %v658_v11 }
 0x33b   :  { %v789_v58 = vmul.f32 %v781_v40, %v2293_v30  ;;  %v2528_v61 = vmul.f32 %v782_v46, %v2295_v50  ;;  %v792_v25 = vadd.f32 %v784_v5, %v768_v9  ;;  %v637_v50 = vmul.f32 %v629_v2, %v618_v1  ;;  %v717_v43 = vld [vmem:[#allocation2 + $0x1d0] sm:$0xff]  ;;  %v667_v46 = vld [vmem:[#allocation2 + $0x180] sm:$0xff] }
 0x33c   :  { %v2486_v23 = vadd.f32 %v985_v19, %v977_v17  ;;  %v2488_v41 = vadd.f32 %v986_v44, %v978_v21  ;;  %v779_v17 = vld [vmem:[#allocation2 + $0x240] sm:$0xff]  ;;  %v780_v21 = vld [vmem:[#allocation2 + $0x248] sm:$0xff] }
 0x33d   :  { %v2490_v29 = vpop.permute.xlu2 %697  ;;  %v2492_v6 = vpop.permute.xlu1 %741  ;;  %v2537_v54 = vmul.f32 %v779_v17, %v2225_v18  ;;  %v2540_v30 = vmul.f32 %v780_v21, %v2217_v47  ;;  %v791_v18 = vadd.f32 %v783_v48, %v767_v37  ;;  %v685_v11 = vadd.f32 %v677_v38, %v637_v50  ;;  %v627_v37 = vld [vmem:[#allocation2 + $0x140] sm:$0xff]  ;;  %v670_v17 = vld [vmem:[#allocation2 + $0x198] sm:$0xff] }
 0x33e   :  { %v2494_v33 = vpop.permute.xlu0 %613  ;;  %v754_v63 = vsel %vm233_vm3, %v2492_v6, %v2473_v3  ;;  %v630_v48 = vld [vmem:[#allocation2 + $0x158] sm:$0xff]  ;;  %v2572_v38 = vadd.f32 %v2291_v36, %v2486_v23 }
 0x33f   :  { %v773_v40 = vmul.f32 %v765_v28, %v754_v63  ;;  %v718_v50 = vld [vmem:[#allocation2 + $0x1d8] sm:$0xff] }
 0x345   :  { %v2496_v27 = vpop.permute.xlu2 %809  ;;  %v694_v51 = vpop.permute.xlu1 %693 }
 0x346   :  { %v654_v35 = vpop.permute.xlu0 %653  ;;  %v708_v5 = vsel %vm208_vm5, %v2321_v39, %v694_v51  ;;  %v706_v1 = vsel %vm208_vm5, %v694_v51, %v2490_v29 }
 0x347   :  { %v656_v51 = vsel %vm183_vm2, %v2462_v34, %v654_v35  ;;  %v725_v28 = vmul.f32 %v717_v43, %v706_v1  ;;  %v766_v34 = vld [vmem:[#allocation2 + $0x218] sm:$0xff] }
 0x348   :  { %v678_v23 = vmul.f32 %v670_v17, %v656_v51 }
 0x34d   :  { %v2498_v57 = vpop.permute.xlu2 %857  ;;  %v2500_v59 = vpop.permute.xlu1 %805 }
 0x34e   :  { %v2502_v16 = vpop.permute.xlu0 %749 }
 0x355   :  { %v2504_v19 = vpop.permute.xlu2 %897  ;;  %v2506_v44 = vpop.permute.xlu1 %801 }
 0x356   :  { %v2508_v14 = vpop.permute.xlu0 %701 }
 0x35d   :  { %v2510_v31 = vpop.permute.xlu2 %945  ;;  %v2512_v62 = vpop.permute.xlu1 %849 }
 0x35e   :  { %v2514_v60 = vpop.permute.xlu0 %813 }
 0x365   :  { %v804_v45 = vpop.permute.xlu2 %803  ;;  %v2534_v26 = vpop.permute.xlu1 %889 }
 0x366   :  { %v817_v4 = vsel %vm266_vm6, %v804_v45, %v2387_v15  ;;  %v819_v22 = vsel %vm266_vm6, %v2370_v12, %v804_v45  ;;  %v2551_v9 = vpop.permute.xlu0 %861  ;;  %v622_v15 = vsel %vm162_vm4, %v2494_v33, %v2313_v56  ;;  %v662_v12 = vsel %vm183_vm2, %v654_v35, %v2362_v8  ;;  %v715_v45 = vld [vmem:[#allocation2 + $0x1c0] sm:$0xff] }
 0x367   :  { %v831_v2 = vmul.f32 %v823_v7, %v819_v22  ;;  %v832_v47 = vmul.f32 %v824_v42, %v817_v4  ;;  %v724_v7 = vmul.f32 %v716_v24, %v708_v5  ;;  %v616_v56 = vsel %vm162_vm4, %v2445_v20, %v2494_v33 }
 0x368   :  { %v2576_v8 = vadd.f32 %v2291_v36, %v2488_v41  ;;  %v675_v63 = vmul.f32 %v667_v46, %v662_v12  ;;  %v635_v33 = vmul.f32 %v627_v37, %v622_v15  ;;  %v704_v41 = vsel %vm208_vm5, %v2490_v29, %v2508_v14  ;;  %v876_v29 = vld [vmem:[#allocation2 + $0x2c8] sm:$0xff]  ;;  %v827_v37 = vld [vmem:[#allocation2 + $0x280] sm:$0xff] }
 0x369   :  { %v839_v42 = vadd.f32 %v831_v2, %v791_v18  ;;  %v840_v21 = vadd.f32 %v832_v47, %v792_v25  ;;  %v752_v25 = vsel %vm233_vm3, %v2473_v3, %v2502_v16  ;;  %v710_v3 = vsel %vm208_vm5, %v2508_v14, %v2321_v39  ;;  %v828_v2 = vld [vmem:[#allocation2 + $0x288] sm:$0xff] }
 0x36a   :  { %v638_v24 = vmul.f32 %v630_v48, %v616_v56  ;;  %v2597_v5 = vadd.f32 %v724_v7, %v2484_v0  ;;  %v816_v4 = vsel %vm266_vm6, %v2496_v27, %v2514_v60  ;;  %v2603_v18 = vadd.f32 %v725_v28, %v685_v11  ;;  %v916_v46 = vld [vmem:[#allocation2 + $0x308] sm:$0xff] }
 0x36b   :  { %v2583_v35 = vadd.f32 %v839_v42, %v2452_v13  ;;  %v2586_v20 = vadd.f32 %v840_v21, %v2454_v10  ;;  %v797_v13 = vadd.f32 %v789_v58, %v773_v40  ;;  %v829_v10 = vld [vmem:[#allocation2 + $0x290] sm:$0xff]  ;;  %v866_v39 = vsel %vm291_vm8, %v2303_v53, %v2498_v57  ;;  %v830_v58 = vld [vmem:[#allocation2 + $0x298] sm:$0xff] }
 0x36c   :  { %v774_v14 = vmul.f32 %v766_v34, %v752_v25  ;;  %v822_v0 = vsel %vm266_vm6, %v2514_v60, %v2506_v44  ;;  %v683_v1 = vadd.f32 %v675_v63, %v635_v33  ;;  %v818_v47 = vsel %vm266_vm6, %v2500_v59, %v2496_v27  ;;  %v917_v42 = vld [vmem:[#allocation2 + $0x310] sm:$0xff]  ;;  %v918_v27 = vld [vmem:[#allocation2 + $0x318] sm:$0xff] }
 0x36d   :  { %v938_v22 = vpop.permute.xlu1 %937  ;;  %v723_v11 = vmul.f32 %v715_v45, %v710_v3  ;;  %v726_v15 = vmul.f32 %v718_v50, %v704_v41  ;;  %v686_v40 = vadd.f32 %v678_v23, %v638_v24  ;;  %v906_v12 = vsel %vm312_vm7, %v2350_v32, %v2504_v19  ;;  %v877_v63 = vld [vmem:[#allocation2 + $0x2d0] sm:$0xff]  ;;  %v878_v34 = vld [vmem:[#allocation2 + $0x2d8] sm:$0xff]  ;;  %v942_v45 = vpop.permute.xlu2 %941  ;;  %v763_v24 = vld [vmem:[#allocation2 + $0x200] sm:$0xff] }
 0x36e   :  { %v902_v43 = vpop.permute.xlu0 %901  ;;  %v820_v60 = vsel %vm266_vm6, %v2506_v44, %v2500_v59  ;;  %v837_v17 = vmul.f32 %v829_v10, %v816_v4  ;;  %v884_v51 = vmul.f32 %v876_v29, %v866_v39  ;;  %v838_v7 = vmul.f32 %v830_v58, %v822_v0  ;;  %v965_v39 = vld [vmem:[#allocation2 + $0x350] sm:$0xff]  ;;  %v875_v58 = vld [vmem:[#allocation2 + $0x2c0] sm:$0xff] }
 0x36f   :  { %v904_v21 = vsel %vm312_vm7, %v2504_v19, %v902_v43  ;;  %v910_v48 = vsel %vm312_vm7, %v902_v43, %v2534_v26  ;;  %v798_v56 = vadd.f32 %v2528_v61, %v774_v14  ;;  %v836_v28 = vmul.f32 %v828_v2, %v818_v47  ;;  %v966_v14 = vld [vmem:[#allocation2 + $0x358] sm:$0xff]  ;;  %v915_v0 = vld [vmem:[#allocation2 + $0x300] sm:$0xff] }
 0x370   :  { %v864_v59 = vsel %vm291_vm8, %v2498_v57, %v2551_v9  ;;  %v870_v44 = vsel %vm291_vm8, %v2551_v9, %v2512_v62  ;;  %v924_v19 = vmul.f32 %v916_v46, %v906_v12  ;;  %v731_v25 = vadd.f32 %v723_v11, %v683_v1  ;;  %v764_v57 = vld [vmem:[#allocation2 + $0x208] sm:$0xff]  ;;  %v963_v12 = vld [vmem:[#allocation2 + $0x340] sm:$0xff] }
 0x371   :  { %v734_v33 = vadd.f32 %v726_v15, %v686_v40  ;;  %v835_v23 = vmul.f32 %v827_v37, %v820_v60  ;;  %v845_v50 = vadd.f32 %v837_v17, %v797_v13  ;;  %v868_v61 = vsel %vm291_vm8, %v2512_v62, %v2303_v53  ;;  %v964_v15 = vld [vmem:[#allocation2 + $0x348] sm:$0xff] }
 0x372   :  { %v925_v41 = vmul.f32 %v917_v42, %v904_v21  ;;  %v926_v3 = vmul.f32 %v918_v27, %v910_v48  ;;  %v846_v10 = vadd.f32 %v838_v7, %v798_v56  ;;  %v885_v4 = vmul.f32 %v877_v63, %v864_v59 }
 0x373   :  { %v886_v29 = vmul.f32 %v878_v34, %v870_v44  ;;  %v908_v9 = vsel %vm312_vm7, %v2534_v26, %v2350_v32  ;;  %v954_v53 = vsel %vm337_vm9, %v942_v45, %v2510_v31  ;;  %v956_v62 = vsel %vm337_vm9, %v938_v22, %v942_v45 }
 0x374   :  { %v933_v40 = vadd.f32 %v925_v41, %v885_v4  ;;  %v923_v17 = vmul.f32 %v915_v0, %v908_v9  ;;  %v989_v42 = vadd.f32 %v845_v50, %v2603_v18  ;;  %v971_v48 = vmul.f32 %v963_v12, %v956_v62  ;;  %v872_v4 = vld [vmem:[#allocation2 + $0x2a8] sm:$0xff]  ;;  %v3289_v9 = vld [vmem:[#allocation9_spill] sm:$0xff] }
 0x375   :  { %v738_v13 = vpop.permute.xlu1 %737  ;;  %v934_v46 = vadd.f32 %v926_v3, %v886_v29  ;;  %v932_v44 = vadd.f32 %v924_v19, %v884_v51  ;;  %v3287_v19 = vld [vmem:[#allocation11_spill] sm:$0xff]  ;;  %v3288_v29 = vld [vmem:[#allocation10_spill] sm:$0xff] }
 0x376   :  { %v950_v43 = vpop.permute.xlu0 %949  ;;  %v756_v1 = vsel %vm233_vm3, %v738_v13, %v2492_v6  ;;  %v758_v32 = vsel %vm233_vm3, %v2502_v16, %v738_v13  ;;  %v883_v6 = vmul.f32 %v875_v58, %v868_v61 }
 0x377   :  { %v952_v26 = vsel %vm337_vm9, %v2510_v31, %v950_v43  ;;  %v958_v2 = vsel %vm337_vm9, %v950_v43, %v938_v22  ;;  %v771_v47 = vmul.f32 %v763_v24, %v758_v32  ;;  %v772_v11 = vmul.f32 %v764_v57, %v756_v1 }
 0x378   :  { %v973_v37 = vmul.f32 %v965_v39, %v952_v26  ;;  %v974_v60 = vmul.f32 %v966_v14, %v958_v2  ;;  %v990_v31 = vadd.f32 %v846_v10, %v734_v33  ;;  %v972_v22 = vmul.f32 %v964_v15, %v954_v53  ;;  %v871_v10 = vld [vmem:[#allocation2 + $0x2a0] sm:$0xff]  ;;  %v912_v39 = vld [vmem:[#allocation2 + $0x2e8] sm:$0xff] }
 0x379   :  { %v795_v7 = vadd.f32 %v2537_v54, %v771_v47  ;;  %v796_v16 = vadd.f32 %v2540_v30, %v772_v11  ;;  %v931_v45 = vadd.f32 %v923_v17, %v883_v6  ;;  %v1021_v33 = vmax.f32 %v2572_v38, 0.0  ;;  %v1035_v47 = vld [vmem:[%s3257_s1 + $0x20] sm:$0xff]  ;;  %v959_v11 = vld [vmem:[#allocation2 + $0x320] sm:$0xff]  ;;  %v960_v15 = vld [vmem:[#allocation2 + $0x328] sm:$0xff] }
 0x37a   :  { %v981_v27 = vadd.f32 %v973_v37, %v933_v40  ;;  %v982_v21 = vadd.f32 %v974_v60, %v934_v46  ;;  %v980_v50 = vadd.f32 %v972_v22, %v932_v44  ;;  %v3290_v37 = vld [vmem:[#allocation13_spill] sm:$0xff]  ;;  %v3291_v60 = vld [vmem:[#allocation12_spill] sm:$0xff] }
 0x37b   :  { %v843_v56 = vadd.f32 %v835_v23, %v795_v7  ;;  %v844_v63 = vadd.f32 %v836_v28, %v796_v16  ;;  %v979_v24 = vadd.f32 %v971_v48, %v931_v45  ;;  %v1022_v23 = vmax.f32 %v2576_v8, 0.0  ;;  %v911_v28 = vld [vmem:[#allocation2 + $0x2e0] sm:$0xff] }
 0x37c   :  { %v997_v34 = vadd.f32 %v989_v42, %v981_v27  ;;  %v998_v59 = vadd.f32 %v990_v31, %v982_v21  ;;  %v1029_v0 = vmin.f32 %v1021_v33, 6.0  ;;  %v3294_v33 = vld [vmem:[#allocation6_spill] sm:$0xff] }
 0x37d   :  { %v987_v41 = vadd.f32 %v843_v56, %v731_v25  ;;  %v988_v61 = vadd.f32 %v844_v63, %v2597_v5  ;;  %v892_v3 = vpop.permute.xlu1 %891  ;;  %v1030_v62 = vmin.f32 %v1022_v23, 6.0 }
 0x37e   :  { %v852_v54 = vpop.permute.xlu0 %851  ;;  %v1017_v30 = vadd.f32 %v2311_v55, %v997_v34  ;;  %v1018_v18 = vadd.f32 %v2311_v55, %v998_v59  ;;  %v905_v51 = vsel %vm312_vm7, %v892_v3, %v2416_v49  ;;  %v907_v5 = vsel %vm312_vm7, %v3287_v19, %v892_v3  ;;  %v3296_v19 = vld [vmem:[#allocation7_spill] sm:$0xff] }
 0x37f   :  { %v865_v38 = vsel %vm291_vm8, %v852_v54, %v3288_v29  ;;  %v867_v8 = vsel %vm291_vm8, %v3289_v9, %v852_v54  ;;  %v995_v14 = vadd.f32 %v987_v41, %v979_v24  ;;  %v996_v13 = vadd.f32 %v988_v61, %v980_v50  ;;  %v1130_v50 = vld [vmem:[%s3257_s1 + $0x28] sm:$0xff] }
 0x380   :  { %v1025_v25 = vmax.f32 %v1017_v30, 0.0  ;;  %v1026_v57 = vmax.f32 %v1018_v18, 0.0  ;;  %v919_v53 = vmul.f32 %v911_v28, %v907_v5  ;;  %v879_v32 = vmul.f32 %v871_v10, %v867_v8  ;;  %v1131_v10 = vld [vmem:[%s3257_s1 + $0x30] sm:$0xff] }
 0x381   :  { %v1015_v43 = vadd.f32 %v2311_v55, %v995_v14  ;;  %v1016_v1 = vadd.f32 %v2311_v55, %v996_v13  ;;  %v880_v26 = vmul.f32 %v872_v4, %v865_v38  ;;  %v920_v2 = vmul.f32 %v912_v39, %v905_v51 }
 0x382   :  { %v1033_v49 = vmin.f32 %v1025_v25, 6.0  ;;  %v1034_v58 = vmin.f32 %v1026_v57, 6.0  ;;  %v927_v16 = vadd.f32 %v919_v53, %v879_v32  ;;  %v3298_v25 = vld [vmem:[#allocation8_spill] sm:$0xff] }
 0x383   :  { %v1023_v40 = vmax.f32 %v1015_v43, 0.0  ;;  %v1024_v46 = vmax.f32 %v1016_v1, 0.0  ;;  %v928_v42 = vadd.f32 %v920_v2, %v880_v26 }
 0x384   :  { %1100 = vmatpush.msrb.mxu2 %v1033_v49  ;;  %1120 = vmatpush.msrb.mxu3 %v1034_v58 }
 0x385   :  { %v1031_v17 = vmin.f32 %v1023_v40, 6.0  ;;  %v1032_v7 = vmin.f32 %v1024_v46, 6.0  ;;  %v1040_v61 = vpop.permute.xlu1 %1039 }
 0x386   :  { %v940_v12 = vpop.permute.xlu0 %939  ;;  %1101 = vmatpush.msrb.mxu2 %v1029_v0  ;;  %1121 = vmatpush.msrb.mxu3 %v1030_v62  ;;  %v2749_v0 = vpop.permute.xlu2 %1141 }
 0x387   :  { %v953_v55 = vsel %vm337_vm9, %v940_v12, %v3290_v37  ;;  %v955_v6 = vsel %vm337_vm9, %v3291_v60, %v940_v12  ;;  %1823 = vmatmul.msk.f32.vlgmr.msrb.gmra.mxu2 %vm1042_vm11, %v1035_v47  ;;  %1824 = vmatmul.msk.f32.vlgmr.msrb.gmra.mxu3 %vm1042_vm11, %v1035_v47 }
 0x388   :  { %v967_v31 = vmul.f32 %v959_v11, %v955_v6  ;;  %v968_v27 = vmul.f32 %v960_v15, %v953_v55  ;;  %1060 = vmatpush.msrb.mxu0 %v1031_v17  ;;  %1080 = vmatpush.msrb.mxu1 %v1032_v7 }
 0x38a   :  { %v975_v21 = vadd.f32 %v967_v31, %v927_v16  ;;  %v976_v22 = vadd.f32 %v968_v27, %v928_v42 }
 0x38c   :  { %v991_v48 = vadd.f32 %v2583_v35, %v975_v21  ;;  %v992_v56 = vadd.f32 %v2586_v20, %v976_v22  ;;  %v3292_v20 = vld [vmem:[#allocation5_spill] sm:$0xff] }
 0x38e   :  { %v1011_v63 = vadd.f32 %v2291_v36, %v991_v48  ;;  %v1012_v34 = vadd.f32 %v2291_v36, %v992_v56  ;;  %v1137_v4 = vpop.permute.xlu0 %1136 }
 0x390   :  { %v1019_v59 = vmax.f32 %v1011_v63, 0.0  ;;  %v1020_v44 = vmax.f32 %v1012_v34, 0.0  ;;  %v1283_v63 = vld [vmem:[#allocation2 + $0x368] sm:$0xff] }
 0x392   :  { %v1027_v45 = vmin.f32 %v1019_v59, 6.0  ;;  %v1028_v41 = vmin.f32 %v1020_v44, 6.0  ;;  %v1323_v59 = vld [vmem:[#allocation2 + $0x3a8] sm:$0xff] }
 0x394   :  { %1061 = vmatpush.msrb.mxu0 %v1027_v45  ;;  %1081 = vmatpush.msrb.mxu1 %v1028_v41 }
 0x395   :  { %1821 = vmatmul.msk.f32.vlgmr.msrb.gmra.mxu0 %vm1042_vm11, %v1035_v47  ;;  %1822 = vmatmul.msk.f32.vlgmr.msrb.gmra.mxu1 %vm1042_vm11, %v1035_v47 }
 0x40a   :  { %v1103_v3 = vpop.f32.mrf.mxu2  ;;  %v1123_v54 = vpop.f32.mrf.mxu3 }
 0x40b   :  { %v1104_v35 = vadd.f32 %v1103_v3, %v1040_v61  ;;  %v1124_v30 = vadd.f32 %v1123_v54, %v1040_v61 }
 0x40d   :  { %v2704_v18 = vadd.f32 %v1104_v35, %v3292_v20  ;;  %v2707_v36 = vadd.f32 %v1124_v30, %v3294_v33 }
 0x40f   :  { %3293 = vst [vmem:[#allocation11_spill] sm:$0xff] %v2704_v18  ;;  %1211 = vmatpush.msra.mxu2 %v2704_v18  ;;  %1234 = vmatpush.msra.mxu3 %v2707_v36 }
 0x410   :  { %3295 = vst [vmem:[#allocation10_spill] sm:$0xff] %v2707_v36  ;;  %1829 = vmatmul.msk.f32.vlgmr.msra.gmra.mxu2 %vm387_vm10, %v1130_v50  ;;  %1831 = vmatmul.msk.f32.vlgmr.msra.gmra.mxu3 %vm387_vm10, %v1130_v50 }
 0x412   :  { %v1063_v24 = vpop.f32.mrf.mxu0  ;;  %v1083_v23 = vpop.f32.mrf.mxu1 }
 0x413   :  { %v1064_v28 = vadd.f32 %v1063_v24, %v1040_v61  ;;  %v1084_v51 = vadd.f32 %v1083_v23, %v1040_v61 }
 0x415   :  { %v2717_v5 = vadd.f32 %v1064_v28, %v3296_v19  ;;  %v2720_v57 = vadd.f32 %v1084_v51, %v3298_v25  ;;  %v1327_v25 = vld [vmem:[#allocation2 + $0x3c8] sm:$0xff] }
 0x417   :  { %3297 = vst [vmem:[#allocation9_spill] sm:$0xff] %v2717_v5  ;;  %1165 = vmatpush.msra.mxu0 %v2717_v5  ;;  %1188 = vmatpush.msra.mxu1 %v2720_v57 }
 0x418   :  { %3299 = vst [vmem:[#allocation13_spill] sm:$0xff] %v2720_v57  ;;  %1825 = vmatmul.msk.f32.vlgmr.msra.gmra.mxu0 %vm387_vm10, %v1130_v50  ;;  %1827 = vmatmul.msk.f32.vlgmr.msra.gmra.mxu1 %vm387_vm10, %v1130_v50 }
 0x419   :  { %1830 = vmatmul.msk.f32.gmra.mxu2 %vm387_vm10, %v1131_v10  ;;  %1832 = vmatmul.msk.f32.gmra.mxu3 %vm387_vm10, %v1131_v10 }
 0x420   :  { %1826 = vmatmul.msk.f32.gmra.mxu0 %vm387_vm10, %v1131_v10  ;;  %1828 = vmatmul.msk.f32.gmra.mxu1 %vm387_vm10, %v1131_v10  ;;  %v1371_v10 = vld [vmem:[#allocation2 + $0x3e8] sm:$0xff] }
 0x493   :  { %v1213_v2 = vpop.f32.mrf.mxu2  ;;  %v1236_v46 = vpop.f32.mrf.mxu3 }
 0x494   :  { %v1214_v47 = vadd.f32 %v1213_v2, %v1137_v4  ;;  %v1237_v12 = vadd.f32 %v1236_v46, %v1137_v4  ;;  %v1284_v2 = vld [vmem:[#allocation2 + $0x370] sm:$0xff] }
 0x495   :  { %v1190_v29 = vpop.f32.mrf.mxu1  ;;  %v1167_v9 = vpop.f32.mrf.mxu0 }
 0x496   :  { %v1191_v38 = vadd.f32 %v1190_v29, %v1137_v4  ;;  %v1168_v39 = vadd.f32 %v1167_v9, %v1137_v4  ;;  %v1244_v15 = vmax.f32 %v1214_v47, 0.0  ;;  %v1245_v37 = vmax.f32 %v1237_v12, 0.0  ;;  %v1324_v47 = vld [vmem:[#allocation2 + $0x3b0] sm:$0xff] }
 0x498   :  { %v1243_v8 = vmax.f32 %v1191_v38, 0.0  ;;  %v1242_v13 = vmax.f32 %v1168_v39, 0.0  ;;  %v2781_v40 = vmin.f32 %v1244_v15, 6.0  ;;  %v2801_v55 = vmin.f32 %v1245_v37, 6.0 }
 0x49a   :  { %v2733_v14 = vmin.f32 %v1243_v8, 6.0  ;;  %v2741_v49 = vmin.f32 %v1242_v13, 6.0 }
 0x49c   :  { %1550 = vrot.lane.b32.xlu2 %v2733_v14, %s1888_s10  ;;  %1510 = vrot.lane.b32.xlu1 %v2733_v14, %s1887_s9  ;;  %v1239_v6 = vpop.f32.mrf.mxu3  ;;  %v1216_v22 = vpop.f32.mrf.mxu2 }
 0x49d   :  { %1262 = vrot.lane.b32.xlu0 %v2733_v14, %s1884_s6  ;;  %v1193_v58 = vpop.f32.mrf.mxu1  ;;  %v1170_v1 = vpop.f32.mrf.mxu0  ;;  %v1240_v17 = vadd.f32 %v1239_v6, %v2749_v0  ;;  %v1217_v56 = vadd.f32 %v1216_v22, %v2749_v0 }
 0x49e   :  { %v1194_v53 = vadd.f32 %v1193_v58, %v2749_v0  ;;  %v1171_v32 = vadd.f32 %v1170_v1, %v2749_v0 }
 0x49f   :  { %v1249_v7 = vmax.f32 %v1240_v17, 0.0  ;;  %v1248_v34 = vmax.f32 %v1217_v56, 0.0 }
 0x4a0   :  { %v1247_v62 = vmax.f32 %v1194_v53, 0.0  ;;  %v1246_v26 = vmax.f32 %v1171_v32, 0.0 }
 0x4a1   :  { %v2832_v42 = vmin.f32 %v1249_v7, 6.0  ;;  %v2866_v30 = vmin.f32 %v1248_v34, 6.0  ;;  %v1282_v34 = vld [vmem:[#allocation2 + $0x360] sm:$0xff] }
 0x4a2   :  { %v2758_v43 = vmin.f32 %v1247_v62, 6.0  ;;  %v2773_v11 = vmin.f32 %v1246_v26, 6.0 }
 0x4a4   :  { %1594 = vrot.lane.b32.xlu2 %v2741_v49, %s1889_s11  ;;  %1258 = vrot.lane.b32.xlu1 %v2741_v49, %s1884_s6 }
 0x4a5   :  { %1302 = vrot.lane.b32.xlu0 %v2733_v14, %s1883_s5 }
 0x4ac   :  { %1298 = vrot.lane.b32.xlu2 %v2741_v49, %s1883_s5  ;;  %1394 = vrot.lane.b32.xlu1 %v2741_v49, %s1882_s0 }
 0x4ad   :  { %1398 = vrot.lane.b32.xlu0 %v2733_v14, %s1882_s0 }
 0x4b4   :  { %1346 = vrot.lane.b32.xlu2 %v2741_v49, %s1885_s7  ;;  %1264 = vrot.lane.b32.xlu1 %v2758_v43, %s1884_s6 }
 0x4b5   :  { %1350 = vrot.lane.b32.xlu0 %v2733_v14, %s1885_s7 }
 0x4bc   :  { %1304 = vrot.lane.b32.xlu2 %v2758_v43, %s1883_s5  ;;  %1552 = vrot.lane.b32.xlu1 %v2758_v43, %s1888_s10 }
 0x4bd   :  { %1462 = vrot.lane.b32.xlu0 %v2733_v14, %s1886_s8 }
 0x4c4   :  { %1400 = vrot.lane.b32.xlu2 %v2758_v43, %s1882_s0  ;;  %1396 = vrot.lane.b32.xlu1 %v2773_v11, %s1882_s0 }
 0x4c5   :  { %1458 = vrot.lane.b32.xlu0 %v2741_v49, %s1886_s8 }
 0x4cc   :  { %1464 = vrot.lane.b32.xlu2 %v2758_v43, %s1886_s8  ;;  %1306 = vrot.lane.b32.xlu1 %v2781_v40, %s1883_s5 }
 0x4cd   :  { %1506 = vrot.lane.b32.xlu0 %v2741_v49, %s1887_s9 }
 0x4d4   :  { %1260 = vrot.lane.b32.xlu2 %v2773_v11, %s1884_s6  ;;  %1402 = vrot.lane.b32.xlu1 %v2781_v40, %s1882_s0 }
 0x4d5   :  { %1546 = vrot.lane.b32.xlu0 %v2741_v49, %s1888_s10 }
 0x4dc   :  { %1266 = vrot.lane.b32.xlu2 %v2781_v40, %s1884_s6  ;;  %1354 = vrot.lane.b32.xlu1 %v2781_v40, %s1885_s7 }
 0x4dd   :  { %1352 = vrot.lane.b32.xlu0 %v2758_v43, %s1885_s7 }
 0x4e4   :  { %1270 = vrot.lane.b32.xlu2 %v2801_v55, %s1884_s6  ;;  %1466 = vrot.lane.b32.xlu1 %v2781_v40, %s1886_s8 }
 0x4e5   :  { %1512 = vrot.lane.b32.xlu0 %v2758_v43, %s1887_s9 }
 0x4ec   :  { %1310 = vrot.lane.b32.xlu2 %v2801_v55, %s1883_s5  ;;  %1514 = vrot.lane.b32.xlu1 %v2781_v40, %s1887_s9 }
 0x4ed   :  { %1460 = vrot.lane.b32.xlu0 %v2773_v11, %s1886_s8 }
 0x4f4   :  { %1406 = vrot.lane.b32.xlu2 %v2801_v55, %s1882_s0  ;;  %1554 = vrot.lane.b32.xlu1 %v2781_v40, %s1888_s10 }
 0x4f5   :  { %1508 = vrot.lane.b32.xlu0 %v2773_v11, %s1887_s9 }
 0x4f6   :  { %v2821_v60 = vpop.permute.xlu2 %1550 }
 0x4fc   :  { %1358 = vrot.lane.b32.xlu2 %v2801_v55, %s1885_s7  ;;  %1606 = vrot.lane.b32.xlu1 %v2801_v55, %s1889_s11 }
 0x4fd   :  { %1548 = vrot.lane.b32.xlu0 %v2773_v11, %s1888_s10 }
 0x4fe   :  { %v2830_v16 = vpop.permute.xlu2 %1594 }
 0x504   :  { %1470 = vrot.lane.b32.xlu2 %v2801_v55, %s1886_s8  ;;  %1272 = vrot.lane.b32.xlu1 %v2832_v42, %s1884_s6 }
 0x505   :  { %1596 = vrot.lane.b32.xlu0 %v2773_v11, %s1889_s11 }
 0x506   :  { %v2840_v31 = vpop.permute.xlu2 %1298 }
 0x50c   :  { %1518 = vrot.lane.b32.xlu2 %v2801_v55, %s1887_s9  ;;  %1312 = vrot.lane.b32.xlu1 %v2832_v42, %s1883_s5 }
 0x50d   :  { %1300 = vrot.lane.b32.xlu0 %v2773_v11, %s1883_s5 }
 0x50e   :  { %v2848_v27 = vpop.permute.xlu1 %1510  ;;  %v2850_v21 = vpop.permute.xlu2 %1346 }
 0x50f   :  { %v1263_v48 = vpop.permute.xlu0 %1262 }
 0x514   :  { %1558 = vrot.lane.b32.xlu2 %v2801_v55, %s1888_s10  ;;  %1408 = vrot.lane.b32.xlu1 %v2832_v42, %s1882_s0 }
 0x515   :  { %1348 = vrot.lane.b32.xlu0 %v2773_v11, %s1885_s7 }
 0x516   :  { %v2859_v44 = vpop.permute.xlu2 %1304  ;;  %v1259_v45 = vpop.permute.xlu1 %1258 }
 0x517   :  { %v1303_v41 = vpop.permute.xlu0 %1302  ;;  %v1278_v61 = vsel %vm162_vm4, %v1259_v45, %v1263_v48 }
 0x518   :  { %v1318_v3 = vsel %vm183_vm2, %v2840_v31, %v1303_v41  ;;  %v1291_v54 = vmul.f32 %v1283_v63, %v1278_v61  ;;  %v1658_v63 = vld [vmem:[%s3258_s2 + $0x50] sm:$0xff]  ;;  %v1530_v61 = vld [vmem:[#allocation2 + $0x4e0] sm:$0xff] }
 0x519   :  { %v1331_v35 = vmul.f32 %v1323_v59, %v1318_v3  ;;  %v1285_v59 = vld [vmem:[#allocation2 + $0x378] sm:$0xff] }
 0x51b   :  { %v1339_v50 = vadd.f32 %v1331_v35, %v1291_v54  ;;  %v1570_v35 = vld [vmem:[#allocation2 + $0x520] sm:$0xff] }
 0x51c   :  { %1360 = vrot.lane.b32.xlu2 %v2832_v42, %s1885_s7  ;;  %1356 = vrot.lane.b32.xlu1 %v2866_v30, %s1885_s7 }
 0x51d   :  { %1602 = vrot.lane.b32.xlu0 %v2781_v40, %s1889_s11 }
 0x51e   :  { %v2874_v24 = vpop.permute.xlu2 %1400  ;;  %v2876_v23 = vpop.permute.xlu1 %1394 }
 0x51f   :  { %v1399_v28 = vpop.permute.xlu0 %1398 }
 0x520   :  { %v2881_v51 = vsel %vm233_vm3, %v2876_v23, %v1399_v28 }
 0x524   :  { %1472 = vrot.lane.b32.xlu2 %v2832_v42, %s1886_s8  ;;  %1468 = vrot.lane.b32.xlu1 %v2866_v30, %s1886_s8 }
 0x525   :  { %1268 = vrot.lane.b32.xlu0 %v2866_v30, %s1884_s6 }
 0x526   :  { %v2889_v4 = vpop.permute.xlu2 %1464  ;;  %v2891_v29 = vpop.permute.xlu1 %1264 }
 0x527   :  { %v2893_v38 = vpop.permute.xlu0 %1350 }
 0x528   :  { %v1366_v9 = vsel %vm208_vm5, %v2850_v21, %v2893_v38 }
 0x529   :  { %v1379_v8 = vmul.f32 %v1371_v10, %v1366_v9 }
 0x52b   :  { %v2899_v39 = vadd.f32 %v1379_v8, %v1339_v50 }
 0x52c   :  { %1520 = vrot.lane.b32.xlu2 %v2832_v42, %s1887_s9  ;;  %1516 = vrot.lane.b32.xlu1 %v2866_v30, %s1887_s9 }
 0x52d   :  { %1308 = vrot.lane.b32.xlu0 %v2866_v30, %s1883_s5 }
 0x52e   :  { %v2907_v13 = vpop.permute.xlu2 %1260  ;;  %v2909_v58 = vpop.permute.xlu1 %1552 }
 0x52f   :  { %v2911_v0 = vpop.permute.xlu0 %1462 }
 0x534   :  { %1560 = vrot.lane.b32.xlu2 %v2832_v42, %s1888_s10  ;;  %1556 = vrot.lane.b32.xlu1 %v2866_v30, %s1888_s10 }
 0x535   :  { %1404 = vrot.lane.b32.xlu0 %v2866_v30, %s1882_s0 }
 0x536   :  { %v1267_v53 = vpop.permute.xlu2 %1266  ;;  %v2919_v62 = vpop.permute.xlu1 %1396 }
 0x537   :  { %v1276_v1 = vsel %vm162_vm4, %v1263_v48, %v1267_v53  ;;  %v2923_v32 = vpop.permute.xlu0 %1458  ;;  %v1659_v48 = vld [vmem:[%s3258_s2 + $0x58] sm:$0xff] }
 0x538   :  { %v1478_v26 = vsel %vm266_vm6, %v2923_v32, %v2911_v0  ;;  %v1292_v7 = vmul.f32 %v1284_v2, %v1276_v1 }
 0x53c   :  { %1608 = vrot.lane.b32.xlu2 %v2832_v42, %s1889_s11  ;;  %1604 = vrot.lane.b32.xlu1 %v2866_v30, %s1889_s11 }
 0x53d   :  { %1600 = vrot.lane.b32.xlu0 %v2758_v43, %s1889_s11 }
 0x53e   :  { %v1271_v15 = vpop.permute.xlu2 %1270  ;;  %v1307_v46 = vpop.permute.xlu1 %1306 }
 0x53f   :  { %v1274_v12 = vsel %vm162_vm4, %v1267_v53, %v1271_v15  ;;  %v1280_v37 = vsel %vm162_vm4, %v1271_v15, %v1259_v45  ;;  %v2939_v6 = vpop.permute.xlu0 %1506  ;;  %v1316_v17 = vsel %vm183_vm2, %v1303_v41, %v1307_v46  ;;  %v1322_v45 = vld [vmem:[#allocation2 + $0x3a0] sm:$0xff]  ;;  %v1325_v41 = vld [vmem:[#allocation2 + $0x3b8] sm:$0xff] }
 0x540   :  { %v1332_v22 = vmul.f32 %v1324_v47, %v1316_v17  ;;  %v1526_v3 = vsel %vm291_vm8, %v2939_v6, %v2848_v27  ;;  %v1290_v10 = vmul.f32 %v1282_v34, %v1280_v37  ;;  %v1293_v2 = vmul.f32 %v1285_v59, %v1274_v12  ;;  %v1434_v12 = vld [vmem:[#allocation2 + $0x460] sm:$0xff] }
 0x541   :  { %v1538_v17 = vmul.f32 %v1530_v61, %v1526_v3 }
 0x542   :  { %v1340_v56 = vadd.f32 %v1332_v22, %v1292_v7 }
 0x544   :  { %1598 = vrot.lane.b32.xlu2 %v2733_v14, %s1889_s11  ;;  %1667 = vperm.xlu1 %1850, %v1659_v48  }
 0x545   :  { %1662 = vperm.xlu0 %1849, %v1658_v63   ;;  %v1372_v63 = vld [vmem:[#allocation2 + $0x3f0] sm:$0xff] }
 0x546   :  { %v1311_v54 = vpop.permute.xlu2 %1310  ;;  %v1403_v50 = vpop.permute.xlu1 %1402 }
 0x547   :  { %v1314_v9 = vsel %vm183_vm2, %v1307_v46, %v1311_v54  ;;  %v1320_v8 = vsel %vm183_vm2, %v1311_v54, %v2840_v31  ;;  %v2960_v53 = vpop.permute.xlu0 %1546  ;;  %v1412_v1 = vsel %vm233_vm3, %v1399_v28, %v1403_v50  ;;  %v1695_v46 = vld [vmem:[%s3258_s2 + $0x60] sm:$0xff]  ;;  %v1418_v28 = vld [vmem:[#allocation2 + $0x420] sm:$0xff] }
 0x548   :  { %v1330_v47 = vmul.f32 %v1322_v45, %v1320_v8  ;;  %v1333_v15 = vmul.f32 %v1325_v41, %v1314_v9  ;;  %v1566_v37 = vsel %vm312_vm7, %v2960_v53, %v2821_v60  ;;  %v1482_v45 = vld [vmem:[#allocation2 + $0x4a0] sm:$0xff]  ;;  %v1419_v8 = vld [vmem:[#allocation2 + $0x428] sm:$0xff] }
 0x549   :  { %v1578_v7 = vmul.f32 %v1570_v35, %v1566_v37  ;;  %v1435_v37 = vld [vmem:[#allocation2 + $0x468] sm:$0xff] }
 0x54a   :  { %v1338_v31 = vadd.f32 %v1330_v47, %v1290_v10  ;;  %v1341_v22 = vadd.f32 %v1333_v15, %v1293_v2  ;;  %v1442_v10 = vmul.f32 %v1434_v12, %v2741_v49  ;;  %v1490_v2 = vmul.f32 %v1482_v45, %v1478_v26  ;;  %v1421_v45 = vld [vmem:[#allocation2 + $0x438] sm:$0xff] }
 0x54b   :  { %v2971_v48 = vadd.f32 %v1578_v7, %v1538_v17  ;;  %v1370_v7 = vld [vmem:[#allocation2 + $0x3e0] sm:$0xff] }
 0x54c   :  { %1698 = vperm.xlu1 %1850, %v1695_v46   ;;  %v1483_v46 = vld [vmem:[#allocation2 + $0x4a8] sm:$0xff] }
 0x54e   :  { %v1407_v34 = vpop.permute.xlu2 %1406  ;;  %v1355_v59 = vpop.permute.xlu1 %1354 }
 0x54f   :  { %v1410_v41 = vsel %vm233_vm3, %v1403_v50, %v1407_v34  ;;  %v1416_v61 = vsel %vm233_vm3, %v1407_v34, %v2876_v23  ;;  %v2978_v3 = vpop.permute.xlu0 %1352  ;;  %v1364_v54 = vsel %vm208_vm5, %v2893_v38, %v1355_v59  ;;  %v1427_v50 = vmul.f32 %v1419_v8, %v2881_v51  ;;  %v1373_v23 = vld [vmem:[#allocation2 + $0x3f8] sm:$0xff] }
 0x550   :  { %v1426_v35 = vmul.f32 %v1418_v28, %v1416_v61  ;;  %v1380_v9 = vmul.f32 %v1372_v63, %v1364_v54  ;;  %v1443_v34 = vmul.f32 %v1435_v37, %v2733_v14  ;;  %v1420_v14 = vld [vmem:[#allocation2 + $0x430] sm:$0xff]  ;;  %v1429_v8 = vmul.f32 %v1421_v45, %v1410_v41  ;;  %v1533_v45 = vld [vmem:[#allocation2 + $0x4f8] sm:$0xff] }
 0x552   :  { %v1450_v47 = vadd.f32 %v1442_v10, %v1426_v35  ;;  %v1388_v15 = vadd.f32 %v1380_v9, %v1340_v56  ;;  %v1451_v56 = vadd.f32 %v1443_v34, %v1427_v50  ;;  %v1437_v10 = vld [vmem:[#allocation2 + $0x478] sm:$0xff]  ;;  %v1428_v9 = vmul.f32 %v1420_v14, %v1412_v1 }
 0x553   :  { %v1445_v37 = vmul.f32 %v1437_v10, %v2801_v55  ;;  %v1531_v55 = vld [vmem:[#allocation2 + $0x4e8] sm:$0xff] }
 0x554   :  { %v1498_v17 = vadd.f32 %v1490_v2, %v1450_v47  ;;  %v1484_v2 = vld [vmem:[#allocation2 + $0x4b0] sm:$0xff] }
 0x556   :  { %v1359_v33 = vpop.permute.xlu2 %1358  ;;  %v1467_v20 = vpop.permute.xlu1 %1466 }
 0x557   :  { %v1362_v38 = vsel %vm208_vm5, %v1355_v59, %v1359_v33  ;;  %v1368_v49 = vsel %vm208_vm5, %v1359_v33, %v2850_v21  ;;  %v2991_v26 = vpop.permute.xlu0 %1512  ;;  %v1476_v51 = vsel %vm266_vm6, %v2911_v0, %v1467_v20  ;;  %v1436_v59 = vld [vmem:[#allocation2 + $0x470] sm:$0xff]  ;;  %v1485_v0 = vld [vmem:[#allocation2 + $0x4b8] sm:$0xff] }
 0x558   :  { %v1378_v28 = vmul.f32 %v1370_v7, %v1368_v49  ;;  %v1381_v12 = vmul.f32 %v1373_v23, %v1362_v38  ;;  %v1491_v63 = vmul.f32 %v1483_v46, %v1476_v51  ;;  %v1444_v47 = vmul.f32 %v1436_v59, %v2781_v40 }
 0x55a   :  { %v1386_v61 = vadd.f32 %v1378_v28, %v1338_v31  ;;  %v1389_v54 = vadd.f32 %v1381_v12, %v1341_v22  ;;  %v1499_v35 = vadd.f32 %v1491_v63, %v1451_v56  ;;  %v1452_v41 = vadd.f32 %v1444_v47, %v1428_v9 }
 0x55c   :  { %v2996_v33 = vadd.f32 %v1498_v17, %v1386_v61  ;;  %v2999_v21 = vadd.f32 %v1499_v35, %v2899_v39  ;;  %v1453_v39 = vadd.f32 %v1445_v37, %v1429_v8  ;;  %v1573_v35 = vld [vmem:[#allocation2 + $0x538] sm:$0xff] }
 0x55e   :  { %v1471_v50 = vpop.permute.xlu2 %1470  ;;  %v1515_v7 = vpop.permute.xlu1 %1514 }
 0x55f   :  { %v1474_v31 = vsel %vm266_vm6, %v1467_v20, %v1471_v50  ;;  %v1480_v1 = vsel %vm266_vm6, %v1471_v50, %v2923_v32  ;;  %v3008_v22 = vpop.permute.xlu0 %1460  ;;  %v1524_v49 = vsel %vm291_vm8, %v2848_v27, %v1515_v7  ;;  %v1571_v20 = vld [vmem:[#allocation2 + $0x528] sm:$0xff]  ;;  %v1532_v27 = vld [vmem:[#allocation2 + $0x4f0] sm:$0xff] }
 0x560   :  { %v1492_v17 = vmul.f32 %v1484_v2, %v1474_v31  ;;  %v1493_v23 = vmul.f32 %v1485_v0, %v1480_v1  ;;  %v1539_v12 = vmul.f32 %v1531_v55, %v1524_v49  ;;  %v1621_v0 = vld [vmem:[#allocation2 + $0x578] sm:$0xff] }
 0x562   :  { %v1500_v46 = vadd.f32 %v1492_v17, %v1452_v41  ;;  %v1501_v34 = vadd.f32 %v1493_v23, %v1453_v39 }
 0x564   :  { %v1644_v40 = vadd.f32 %v1500_v46, %v1388_v15  ;;  %v1645_v38 = vadd.f32 %v1501_v34, %v1389_v54 }
 0x566   :  { %v1519_v51 = vpop.permute.xlu2 %1518  ;;  %v1555_v56 = vpop.permute.xlu1 %1554 }
 0x567   :  { %v3013_v28 = vpop.permute.xlu0 %1508  ;;  %v1564_v32 = vsel %vm312_vm7, %v2821_v60, %v1555_v56  ;;  %v1522_v61 = vsel %vm291_vm8, %v1515_v7, %v1519_v51  ;;  %v1528_v54 = vsel %vm291_vm8, %v1519_v51, %v2939_v6  ;;  %v1572_v60 = vld [vmem:[#allocation2 + $0x530] sm:$0xff] }
 0x568   :  { %v3022_v15 = vsel %vm291_vm8, %v3013_v28, %v2991_v26  ;;  %v1579_v63 = vmul.f32 %v1571_v20, %v1564_v32  ;;  %v1540_v37 = vmul.f32 %v1532_v27, %v1522_v61  ;;  %v1541_v6 = vmul.f32 %v1533_v45, %v1528_v54 }
 0x56a   :  { %v3024_v14 = vadd.f32 %v1579_v63, %v1539_v12  ;;  %v1620_v12 = vld [vmem:[#allocation2 + $0x570] sm:$0xff] }
 0x56e   :  { %v1559_v59 = vpop.permute.xlu2 %1558  ;;  %v1607_v10 = vpop.permute.xlu1 %1606 }
 0x56f   :  { %v1562_v9 = vsel %vm312_vm7, %v1555_v56, %v1559_v59  ;;  %v1568_v8 = vsel %vm312_vm7, %v1559_v59, %v2960_v53  ;;  %v3036_v2 = vpop.permute.xlu0 %1548  ;;  %v1616_v47 = vsel %vm337_vm9, %v1607_v10, %v2830_v16 }
 0x570   :  { %v1580_v50 = vmul.f32 %v1572_v60, %v1562_v9  ;;  %v1581_v7 = vmul.f32 %v1573_v35, %v1568_v8  ;;  %v1629_v41 = vmul.f32 %v1621_v0, %v1616_v47  ;;  %v1423_v60 = vld [vmem:[#allocation2 + $0x448] sm:$0xff]  ;;  %v1415_v35 = vsel %vm233_vm3, %v2919_v62, %v2874_v24  ;;  %v1440_v0 = vld [vmem:[#allocation2 + $0x490] sm:$0xff] }
 0x571   :  { %v1439_v47 = vld [vmem:[#allocation2 + $0x488] sm:$0xff] }
 0x572   :  { %v1588_v31 = vadd.f32 %v1580_v50, %v1540_v37  ;;  %v1589_v1 = vadd.f32 %v1581_v7, %v1541_v6  ;;  %v1438_v37 = vld [vmem:[#allocation2 + $0x480] sm:$0xff]  ;;  %v1287_v6 = vld [vmem:[#allocation2 + $0x388] sm:$0xff]  ;;  %v1431_v50 = vmul.f32 %v1423_v60, %v1415_v35 }
 0x573   :  { %v1574_v7 = vld [vmem:[#allocation2 + $0x540] sm:$0xff] }
 0x574   :  { %v1637_v39 = vadd.f32 %v1629_v41, %v1589_v1  ;;  %v1486_v1 = vld [vmem:[#allocation2 + $0x4c0] sm:$0xff]  ;;  %v1479_v41 = vsel %vm266_vm6, %v3008_v22, %v2889_v4 }
 0x576   :  { %v3041_v17 = vpop.permute.xlu2 %1360  ;;  %v3043_v23 = vpop.permute.xlu1 %1272  ;;  %v3045_v53 = vadd.f32 %v1645_v38, %v1637_v39  ;;  %v1534_v39 = vld [vmem:[#allocation2 + $0x500] sm:$0xff] }
 0x577   :  { %v3047_v46 = vpop.permute.xlu0 %1596 }
 0x578   :  { %3300 = vst [vmem:[#allocation12_spill] sm:$0xff] %v3045_v53  ;;  %v1537_v53 = vld [vmem:[#allocation2 + $0x518] sm:$0xff] }
 0x57e   :  { %v3049_v34 = vpop.permute.xlu2 %1472  ;;  %v3051_v55 = vpop.permute.xlu1 %1312 }
 0x57f   :  { %v1301_v49 = vpop.permute.xlu0 %1300 }
 0x586   :  { %v3053_v20 = vpop.permute.xlu2 %1520  ;;  %v3055_v51 = vpop.permute.xlu1 %1408 }
 0x587   :  { %v1349_v56 = vpop.permute.xlu0 %1348  ;;  %v1417_v60 = vsel %vm233_vm3, %v3055_v51, %v2919_v62  ;;  %v1542_v62 = vmul.f32 %v1534_v39, %v3022_v15 }
 0x588   :  { %v1367_v15 = vsel %vm208_vm5, %v1349_v56, %v2978_v3 }
 0x58e   :  { %v3057_v32 = vpop.permute.xlu2 %1560  ;;  %v3059_v63 = vpop.permute.xlu1 %1356 }
 0x58f   :  { %v1603_v27 = vpop.permute.xlu0 %1602 }
 0x590   :  { %v1610_v38 = vsel %vm337_vm9, %v1603_v27, %v1607_v10  ;;  %v1441_v10 = vld [vmem:[#allocation2 + $0x498] sm:$0xff] }
 0x591   :  { %v1628_v45 = vmul.f32 %v1620_v12, %v1610_v38  ;;  %v3088_v12 = vmul.f32 %v1440_v0, %v2866_v30  ;;  %v1447_v38 = vmul.f32 %v1439_v47, %v2758_v43  ;;  %v3097_v35 = vmul.f32 %v1441_v10, %v2832_v42  ;;  %v1326_v0 = vld [vmem:[#allocation2 + $0x3c0] sm:$0xff] }
 0x592   :  { %v1319_v30 = vsel %vm183_vm2, %v1301_v49, %v2859_v44  ;;  %v1321_v43 = vsel %vm183_vm2, %v3051_v55, %v1301_v49  ;;  %v1494_v47 = vmul.f32 %v1486_v1, %v1479_v41  ;;  %v1281_v42 = vsel %vm162_vm4, %v3043_v23, %v2907_v13  ;;  %v1618_v10 = vld [vmem:[#allocation2 + $0x560] sm:$0xff] }
 0x593   :  { %v1636_v61 = vadd.f32 %v1628_v45, %v1588_v31  ;;  %v1567_v31 = vsel %vm312_vm7, %v3036_v2, %v2909_v58  ;;  %v1422_v45 = vld [vmem:[#allocation2 + $0x440] sm:$0xff]  ;;  %v1335_v39 = vmul.f32 %v1327_v25, %v1319_v30 }
 0x594   :  { %v1582_v18 = vmul.f32 %v1574_v7, %v1567_v31  ;;  %v1481_v7 = vsel %vm266_vm6, %v3049_v34, %v3008_v22  ;;  %v1374_v49 = vld [vmem:[#allocation2 + $0x400] sm:$0xff]  ;;  %v1369_v31 = vsel %vm208_vm5, %v3041_v17, %v1349_v56  ;;  %v1430_v1 = vmul.f32 %v1422_v45, %v1417_v60 }
 0x595   :  { %v3063_v54 = vadd.f32 %v1644_v40, %v1636_v61  ;;  %v1279_v40 = vsel %vm162_vm4, %v2907_v13, %v2891_v29  ;;  %v1446_v61 = vmul.f32 %v1438_v37, %v2773_v11  ;;  %v3105_v11 = vadd.f32 %v1447_v38, %v1431_v50  ;;  %v1286_v37 = vld [vmem:[#allocation2 + $0x380] sm:$0xff]  ;;  %v1375_v50 = vld [vmem:[#allocation2 + $0x408] sm:$0xff] }
 0x596   :  { %v3069_v59 = vpop.permute.xlu2 %1608  ;;  %v3071_v9 = vpop.permute.xlu1 %1468  ;;  %v1295_v36 = vmul.f32 %v1287_v6, %v1279_v40  ;;  %v1619_v6 = vld [vmem:[#allocation2 + $0x568] sm:$0xff]  ;;  %v1489_v40 = vld [vmem:[#allocation2 + $0x4d8] sm:$0xff]  ;;  %v1334_v38 = vmul.f32 %v1326_v0, %v1321_v43  ;;  %v3129_v5 = vadd.f32 %v1582_v18, %v1542_v62  ;;  %v1529_v56 = vsel %vm291_vm8, %v3053_v20, %v3013_v28 }
 0x597   :  { %3301 = vst [vmem:[#allocation14_spill] sm:$0xff] %v3063_v54  ;;  %v3073_v8 = vpop.permute.xlu0 %1268  ;;  %v1294_v25 = vmul.f32 %v1286_v37, %v1281_v42  ;;  %v3135_v30 = vmul.f32 %v1489_v40, %v1481_v7  ;;  %v1382_v0 = vmul.f32 %v1374_v49, %v1369_v31  ;;  %v1454_v43 = vadd.f32 %v1446_v61, %v1430_v1  ;;  %v1329_v18 = vld [vmem:[#allocation2 + $0x3d8] sm:$0xff]  ;;  %v1288_v42 = vld [vmem:[#allocation2 + $0x390] sm:$0xff] }
 0x598   :  { %3302 = vst [vmem:[#allocation15_spill] sm:$0xff] %v3129_v5  ;;  %v1545_v28 = vmul.f32 %v1537_v53, %v1529_v56  ;;  %v1289_v37 = vld [vmem:[#allocation2 + $0x398] sm:$0xff]  ;;  %v1576_v56 = vld [vmem:[#allocation2 + $0x550] sm:$0xff] }
 0x599   :  { %v1342_v5 = vadd.f32 %v1334_v38, %v1294_v25  ;;  %v3167_v40 = vadd.f32 %v1494_v47, %v1454_v43  ;;  %v1377_v7 = vld [vmem:[#allocation2 + $0x418] sm:$0xff]  ;;  %v1487_v47 = vld [vmem:[#allocation2 + $0x4c8] sm:$0xff] }
 0x59a   :  { %v1625_v49 = vld [vmem:[#allocation2 + $0x598] sm:$0xff] }
 0x59b   :  { %v3159_v61 = vadd.f32 %v1382_v0, %v1342_v5  ;;  %v1365_v5 = vsel %vm208_vm5, %v2978_v3, %v3059_v63  ;;  %v1575_v0 = vld [vmem:[#allocation2 + $0x548] sm:$0xff] }
 0x59e   :  { %v1599_v13 = vpop.permute.xlu2 %1598  ;;  %v3122_v41 = vpop.permute.xlu1 %1516 }
 0x59f   :  { %v1612_v19 = vsel %vm337_vm9, %v1599_v13, %v1603_v27  ;;  %v1614_v22 = vsel %vm337_vm9, %v2830_v16, %v1599_v13  ;;  %v1309_v57 = vpop.permute.xlu0 %1308  ;;  %v1383_v27 = vmul.f32 %v1375_v50, %v1367_v15  ;;  %v1343_v13 = vadd.f32 %v1335_v39, %v1295_v36  ;;  %v1488_v39 = vld [vmem:[#allocation2 + $0x4d0] sm:$0xff] }
 0x5a0   :  { %v1626_v45 = vmul.f32 %v1618_v10, %v1614_v22  ;;  %v1627_v60 = vmul.f32 %v1619_v6, %v1612_v19  ;;  %v1315_v62 = vsel %vm183_vm2, %v1309_v57, %v3051_v55  ;;  %v1577_v10 = vld [vmem:[#allocation2 + $0x558] sm:$0xff]  ;;  %v1569_v19 = vsel %vm312_vm7, %v3057_v32, %v3036_v2 }
 0x5a1   :  { %v1317_v55 = vsel %vm183_vm2, %v2859_v44, %v1309_v57  ;;  %v3161_v2 = vadd.f32 %v1383_v27, %v1343_v13  ;;  %v1337_v6 = vmul.f32 %v1329_v18, %v1315_v62  ;;  %v1585_v57 = vmul.f32 %v1577_v10, %v1569_v19  ;;  %v1535_v13 = vld [vmem:[#allocation2 + $0x508] sm:$0xff] }
 0x5a2   :  { %v1634_v54 = vadd.f32 %v1626_v45, %v2971_v48  ;;  %v1635_v16 = vadd.f32 %v1627_v60, %v3024_v14  ;;  %v1275_v48 = vsel %vm162_vm4, %v3073_v8, %v3043_v23  ;;  %v1328_v14 = vld [vmem:[#allocation2 + $0x3d0] sm:$0xff]  ;;  %v1277_v23 = vsel %vm162_vm4, %v2891_v29, %v3073_v8 }
 0x5a3   :  { %v1363_v44 = vsel %vm208_vm5, %v3059_v63, %v3041_v17  ;;  %v1617_v29 = vsel %vm337_vm9, %v3069_v59, %v3047_v46  ;;  %v1297_v8 = vmul.f32 %v1289_v37, %v1275_v48  ;;  %v1477_v17 = vsel %vm266_vm6, %v2889_v4, %v3071_v9  ;;  %v1376_v60 = vld [vmem:[#allocation2 + $0x410] sm:$0xff] }
 0x5a4   :  { %v3154_v36 = vadd.f32 %v2996_v33, %v1634_v54  ;;  %v3157_v53 = vadd.f32 %v2999_v21, %v1635_v16  ;;  %v1424_v33 = vld [vmem:[#allocation2 + $0x450] sm:$0xff]  ;;  %v1425_v21 = vld [vmem:[#allocation2 + $0x458] sm:$0xff]  ;;  %v1336_v50 = vmul.f32 %v1328_v14, %v1317_v55  ;;  %v1296_v3 = vmul.f32 %v1288_v42, %v1277_v23  ;;  %v1623_v23 = vld [vmem:[#allocation2 + $0x588] sm:$0xff] }
 0x5a5   :  { %v1475_v63 = vsel %vm266_vm6, %v3071_v9, %v3049_v34  ;;  %v1345_v38 = vadd.f32 %v1337_v6, %v1297_v8  ;;  %v1385_v25 = vmul.f32 %v1377_v7, %v1363_v44  ;;  %v1633_v34 = vmul.f32 %v1625_v49, %v1617_v29  ;;  %v1624_v55 = vld [vmem:[#allocation2 + $0x590] sm:$0xff] }
 0x5a6   :  { %v1557_v54 = vpop.permute.xlu1 %1556  ;;  %v1495_v9 = vmul.f32 %v1487_v47, %v1477_v17  ;;  %v1344_v27 = vadd.f32 %v1336_v50, %v1296_v3  ;;  %v1523_v43 = vsel %vm291_vm8, %v3122_v41, %v3053_v20  ;;  %v1593_v18 = vadd.f32 %v1585_v57, %v1545_v28  ;;  %v1622_v28 = vld [vmem:[#allocation2 + $0x580] sm:$0xff]  ;;  %v3303_v50 = vld [vmem:[#allocation15_spill] sm:$0xff] }
 0x5a7   :  { %v1405_v15 = vpop.permute.xlu0 %1404  ;;  %v1563_v45 = vsel %vm312_vm7, %v1557_v54, %v3057_v32  ;;  %v1496_v62 = vmul.f32 %v1488_v39, %v1475_v63  ;;  %v1525_v10 = vsel %vm291_vm8, %v2991_v26, %v3122_v41  ;;  %v1384_v19 = vmul.f32 %v1376_v60, %v1365_v5 }
 0x5a8   :  { %v1411_v31 = vsel %vm233_vm3, %v1405_v15, %v3055_v51  ;;  %v1413_v1 = vsel %vm233_vm3, %v2874_v24, %v1405_v15  ;;  %v1565_v51 = vsel %vm312_vm7, %v2909_v58, %v1557_v54  ;;  %v1536_v24 = vld [vmem:[#allocation2 + $0x510] sm:$0xff]  ;;  %v1584_v58 = vmul.f32 %v1576_v56, %v1563_v45 }
 0x5a9   :  { %v1432_v22 = vmul.f32 %v1424_v33, %v1413_v1  ;;  %v1433_v4 = vmul.f32 %v1425_v21, %v1411_v31  ;;  %v1393_v37 = vadd.f32 %v1385_v25, %v1345_v38  ;;  %v1583_v14 = vmul.f32 %v1575_v0, %v1565_v51  ;;  %v3305_v25 = vld [vmem:[#allocation12_spill] sm:$0xff] }
 0x5aa   :  { %v1641_v20 = vadd.f32 %v1633_v34, %v1593_v18  ;;  %v1544_v42 = vmul.f32 %v1536_v24, %v1523_v43  ;;  %v1392_v57 = vadd.f32 %v1384_v19, %v1344_v27  ;;  %v1543_v44 = vmul.f32 %v1535_v13, %v1525_v10 }
 0x5ab   :  { %v1456_v16 = vadd.f32 %v3088_v12, %v1432_v22  ;;  %v1457_v32 = vadd.f32 %v3097_v35, %v1433_v4  ;;  %v1503_v12 = vadd.f32 %v1495_v9, %v3105_v11 }
 0x5ac   :  { %v1592_v41 = vadd.f32 %v1584_v58, %v1544_v42  ;;  %v1591_v54 = vadd.f32 %v1583_v14, %v1543_v44  ;;  %v1694_v58 = vld [vmem:[%s3257_s1 + $0x38] sm:$0xff]  ;;  %v3307_v42 = vld [vmem:[#allocation13_spill] sm:$0xff] }
 0x5ad   :  { %v1505_v48 = vadd.f32 %v3135_v30, %v1457_v32  ;;  %v1504_v35 = vadd.f32 %v1496_v62, %v1456_v16  ;;  %v1647_v17 = vadd.f32 %v1503_v12, %v3161_v2  ;;  %v3304_v2 = vld [vmem:[#allocation14_spill] sm:$0xff] }
 0x5ae   :  { %v1605_v6 = vpop.permute.xlu1 %1604 }
 0x5af   :  { %v1649_v33 = vadd.f32 %v1505_v48, %v1393_v37  ;;  %v1601_v21 = vpop.permute.xlu0 %1600  ;;  %v1611_v26 = vsel %vm337_vm9, %v1605_v6, %v3069_v59  ;;  %v1648_v8 = vadd.f32 %v1504_v35, %v1392_v57  ;;  %v1646_v59 = vadd.f32 %v3167_v40, %v3159_v61 }
 0x5b0   :  { %v1615_v30 = vsel %vm337_vm9, %v3047_v46, %v1601_v21  ;;  %v1613_v11 = vsel %vm337_vm9, %v1601_v21, %v1605_v6  ;;  %v1632_v5 = vmul.f32 %v1624_v55, %v1611_v26  ;;  %v3309_v6 = vld [vmem:[#allocation8_spill] sm:$0xff] }
 0x5b1   :  { %v1630_v7 = vmul.f32 %v1622_v28, %v1615_v30  ;;  %v1631_v49 = vmul.f32 %v1623_v23, %v1613_v11  ;;  %v1657_v29 = vadd.f32 %v1649_v33, %v1641_v20  ;;  %v3306_v20 = vld [vmem:[#allocation9_spill] sm:$0xff]  ;;  %v3308_v28 = vld [vmem:[#allocation7_spill] sm:$0xff]  ;;  %v3311_v11 = vld [vmem:[#allocation10_spill] sm:$0xff] }
 0x5b2   :  { %v1640_v47 = vadd.f32 %v1632_v5, %v1592_v41  ;;  %v3310_v41 = vld [vmem:[#allocation11_spill] sm:$0xff] }
 0x5b3   :  { %v1638_v15 = vadd.f32 %v1630_v7, %v3303_v50  ;;  %v1639_v3 = vadd.f32 %v1631_v49, %v1591_v54  ;;  %v3312_v54 = vld [vmem:[#allocation5_spill] sm:$0xff]  ;;  %v3313_v49 = vld [vmem:[#allocation6_spill] sm:$0xff] }
 0x5b4   :  { %v1656_v63 = vadd.f32 %v1648_v8, %v1640_v47 }
 0x5b5   :  { %v1654_v46 = vadd.f32 %v1646_v59, %v1638_v15  ;;  %v1655_v31 = vadd.f32 %v1647_v17, %v1639_v3 }
 0x5b6   :  { %v1668_v52 = vpop.permute.xlu1 %1667 }
 0x5b7   :  { %v1663_v1 = vpop.permute.xlu0 %1662  ;;  %v1674_v39 = vadd.f32 %v1668_v52, %v1654_v46  ;;  %v1675_v38 = vadd.f32 %v1668_v52, %v1655_v31  ;;  %v1676_v22 = vadd.f32 %v1668_v52, %v1656_v63  ;;  %v1677_v4 = vadd.f32 %v1668_v52, %v1657_v29 }
 0x5b8   :  { %v1670_v56 = vadd.f32 %v1663_v1, %v3154_v36  ;;  %v1671_v45 = vadd.f32 %v1663_v1, %v3157_v53  ;;  %v1672_v60 = vadd.f32 %v1663_v1, %v3304_v2  ;;  %v1673_v34 = vadd.f32 %v1663_v1, %v3305_v25 }
 0x5b9   :  { %v1682_v9 = vmax.f32 %v1674_v39, 0.0  ;;  %v1683_v61 = vmax.f32 %v1675_v38, 0.0  ;;  %v1684_v40 = vmax.f32 %v1676_v22, 0.0  ;;  %v1685_v0 = vmax.f32 %v1677_v4, 0.0 }
 0x5ba   :  { %v1678_v51 = vmax.f32 %v1670_v56, 0.0  ;;  %v1679_v27 = vmax.f32 %v1671_v45, 0.0  ;;  %v1680_v24 = vmax.f32 %v1672_v60, 0.0  ;;  %v1681_v43 = vmax.f32 %v1673_v34, 0.0 }
 0x5bb   :  { %v1690_v16 = vmin.f32 %v1682_v9, 6.0  ;;  %v1691_v32 = vmin.f32 %v1683_v61, 6.0  ;;  %v1692_v18 = vmin.f32 %v1684_v40, 6.0  ;;  %v1693_v62 = vmin.f32 %v1685_v0, 6.0 }
 0x5bc   :  { %v1686_v36 = vmin.f32 %v1678_v51, 6.0  ;;  %v1687_v53 = vmin.f32 %v1679_v27, 6.0  ;;  %v1688_v13 = vmin.f32 %v1680_v24, 6.0  ;;  %v1689_v10 = vmin.f32 %v1681_v43, 6.0 }
 0x5bd   :  { %1718 = vmatpush.msrb.mxu0 %v1690_v16  ;;  %1738 = vmatpush.msrb.mxu1 %v1691_v32 }
 0x5be   :  { %1758 = vmatpush.msrb.mxu2 %v1692_v18  ;;  %1778 = vmatpush.msrb.mxu3 %v1693_v62  ;;  %v1699_v19 = vpop.permute.xlu1 %1698 }
 0x5bf   :  { %1719 = vmatpush.msrb.mxu0 %v1686_v36  ;;  %1739 = vmatpush.msrb.mxu1 %v1687_v53 }
 0x5c0   :  { %1759 = vmatpush.msrb.mxu2 %v1688_v13  ;;  %1779 = vmatpush.msrb.mxu3 %v1689_v10 }
 0x5c1   :  { %1833 = vmatmul.msk.f32.vlgmr.msrb.gmra.mxu0 %vm1042_vm11, %v1694_v58  ;;  %1834 = vmatmul.msk.f32.vlgmr.msrb.gmra.mxu1 %vm1042_vm11, %v1694_v58 }
 0x5c2   :  { %1835 = vmatmul.msk.f32.vlgmr.msrb.gmra.mxu2 %vm1042_vm11, %v1694_v58  ;;  %1836 = vmatmul.msk.f32.vlgmr.msrb.gmra.mxu3 %vm1042_vm11, %v1694_v58 }
 0x63e   :  { %v1721_v37 = vpop.f32.mrf.mxu0  ;;  %v1741_v48 = vpop.f32.mrf.mxu1 }
 0x63f   :  { %v1722_v14 = vadd.f32 %v1721_v37, %v1699_v19  ;;  %v1742_v55 = vadd.f32 %v1741_v48, %v1699_v19 }
 0x641   :  { %v1784_v12 = vadd.f32 %v1722_v14, %v3306_v20  ;;  %v1785_v35 = vadd.f32 %v1742_v55, %v3307_v42 }
 0x643   :  { %v1788_v23 = vadd.f32 %v1784_v12, %v3308_v28  ;;  %v1789_v57 = vadd.f32 %v1785_v35, %v3309_v6 }
 0x645   :  { %1792 = vst [vmem:[%s3260_s4] sm:$0xff] %v1788_v23  ;;  %v1761_v44 = vpop.f32.mrf.mxu2  ;;  %v1781_v33 = vpop.f32.mrf.mxu3 }
 0x646   :  { %1793 = vst [vmem:[%s3260_s4 + $0x8] sm:$0xff] %v1789_v57  ;;  %v1762_v21 = vadd.f32 %v1761_v44, %v1699_v19  ;;  %v1782_v26 = vadd.f32 %v1781_v33, %v1699_v19 }
 0x648   :  { %v1786_v30 = vadd.f32 %v1762_v21, %v3310_v41  ;;  %v1787_v5 = vadd.f32 %v1782_v26, %v3311_v11 }
 0x64a   :  { %v1790_v7 = vadd.f32 %v1786_v30, %v3312_v54  ;;  %v1791_v29 = vadd.f32 %v1787_v5, %v3313_v49 }
 0x64c   :  { %1794 = vst [vmem:[%s3260_s4 + $0x10] sm:$0xff] %v1790_v7 }
 0x64d   :  { %1795 = vst [vmem:[%s3260_s4 + $0x18] sm:$0xff] %v1791_v29 }
 0x64e   :  { %1800 = vsyncpa [#allocation3], 1 }

</bundles_post_ra>
